<compile_context>
chip_gen: v5e
topology: v5e:2x2
jax: 0.10.0
libtpu: 0.0.40
codegen_flags: <defaults>
</compile_context>

<pallas_src>
import functools

import jax
import jax.numpy as jnp
from jax.experimental import pallas as pl
from jax.experimental.pallas import tpu as pltpu

NUM_CLASSES = 13
STEM_CH = 32            # real resnet101 stem = 64
INNER_PLANES = 256      # ASPP inner planes (as in the module)
LOW_PLANES = 48         # low_conv_planes (as in the module)
ASPP_DILATIONS = (6, 12, 18)

_VMEM_LIMIT = 48 * 1024 * 1024   # explicit scoped-VMEM budget (< 64 MiB physical on v7x)


# --------------------------------------------------------------------------
# small helpers (tile selection / padding)
# --------------------------------------------------------------------------
def _round_up(x, m):
    return (x + m - 1) // m * m


def _pad2(x, rows, cols):
    r, c = x.shape
    if r == rows and c == cols:
        return x
    return jnp.pad(x, ((0, rows - r), (0, cols - c)))


def _pick_m(m):
    """(padded M, tile M).  Second-to-last block dim only needs %8."""
    if m <= 512:
        mp = _round_up(m, 8)
        return mp, mp
    for t in (512, 256):
        if m % t == 0:
            return m, t
    return _round_up(m, 256), 256


def _pick_n(n):
    """(padded N, tile N).  N < 128 -> full-extent lane block, no padding."""
    if n < 128:
        return n, n
    np_ = _round_up(n, 128)
    if np_ <= 512:
        return np_, np_
    return np_, (256 if np_ % 256 == 0 else 128)


def _pick_k(k):
    """(padded K, tile K).  K <= 1024 -> single full-extent K step, no padding."""
    if k <= 1024:
        return k, k
    kp = _round_up(k, 512)
    return kp, 512


def _row_chunk(hw):
    for t in (512, 256, 128, 64, 32, 16, 8):
        if hw % t == 0:
            return t
    return hw


# --------------------------------------------------------------------------
# Pallas kernels
# --------------------------------------------------------------------------
def _matmul_kernel(*refs, relu, has_residual):
    """o = act(a @ b + bias [+ residual]); BN scale already folded into b's columns."""
    if has_residual:
        a_ref, b_ref, t_ref, r_ref, o_ref, acc_ref = refs
    else:
        a_ref, b_ref, t_ref, o_ref, acc_ref = refs
        r_ref = None

    @pl.when(pl.program_id(2) == 0)
    def _():
        acc_ref[...] = jnp.zeros_like(acc_ref)

    acc_ref[...] += jnp.dot(a_ref[...], b_ref[...],
                            preferred_element_type=jnp.float32)

    @pl.when(pl.program_id(2) == pl.num_programs(2) - 1)
    def _():
        y = acc_ref[...] + t_ref[...]
        if has_residual:
            y = y + r_ref[...]
        if relu:
            y = jnp.maximum(y, 0.0)
        o_ref[...] = y.astype(o_ref.dtype)


def _direct_conv_kernel(x_ref, w_ref, t_ref, o_ref, acc_ref,
                        *, kh, kw, dil, Ho, Wo, relu):
    """Stride-1 kxk conv: padded image tile resident in VMEM, one shifted-tap
    bf16 matmul per (i,j) tap accumulated into an f32 scratch; fused bias+ReLU."""
    cin = x_ref.shape[3]
    acc_ref[...] = jnp.zeros_like(acc_ref)
    for i in range(kh):
        for j in range(kw):
            patch = x_ref[0, i * dil:i * dil + Ho, j * dil:j * dil + Wo, :]
            a = patch.reshape(Ho * Wo, cin).astype(jnp.bfloat16)
            wk = w_ref[(i * kw + j) * cin:(i * kw + j + 1) * cin, :]
            acc_ref[...] += jnp.dot(a, wk, preferred_element_type=jnp.float32)
    y = acc_ref[...] + t_ref[...]
    if relu:
        y = jnp.maximum(y, 0.0)
    o_ref[0] = y.astype(o_ref.dtype)


def _dropout2d_kernel(x_ref, m_ref, o_ref):
    o_ref[...] = x_ref[...] * m_ref[...]          # mask broadcasts over the H*W chunk


def _gap_kernel(x_ref, o_ref, *, inv_hw):
    @pl.when(pl.program_id(1) == 0)
    def _():
        o_ref[...] = jnp.zeros_like(o_ref)
    o_ref[...] += jnp.sum(x_ref[...], axis=1, keepdims=True)

    @pl.when(pl.program_id(1) == pl.num_programs(1) - 1)
    def _():
        o_ref[...] = o_ref[...] * inv_hw


# --------------------------------------------------------------------------
# Pallas wrappers
# --------------------------------------------------------------------------
def pallas_matmul(a, b, bias=None, relu=False, residual=None):
    """(M,K)@(K,N) on the MXU in bf16 with f32 accumulation; fused per-column bias,
    optional residual add and ReLU epilogue."""
    M, K = a.shape
    K2, N = b.shape
    assert K == K2
    if bias is None:
        bias = jnp.zeros((N,), jnp.float32)

    Mp, TM = _pick_m(M)
    Np, TN = _pick_n(N)
    Kp, TK = _pick_k(K)

    a_p = _pad2(a.astype(jnp.float32), Mp, Kp).astype(jnp.bfloat16)
    b_p = _pad2(b.astype(jnp.float32), Kp, Np).astype(jnp.bfloat16)
    t_p = _pad2(bias.reshape(1, N).astype(jnp.float32), 1, Np)

    has_res = residual is not None
    inputs = [a_p, b_p, t_p]
    in_specs = [
        pl.BlockSpec((TM, TK), lambda i, j, k: (i, k)),
        pl.BlockSpec((TK, TN), lambda i, j, k: (k, j)),
        pl.BlockSpec((1, TN), lambda i, j, k: (0, j)),
    ]
    if has_res:
        inputs.append(_pad2(residual.astype(jnp.float32), Mp, Np))
        in_specs.append(pl.BlockSpec((TM, TN), lambda i, j, k: (i, j)))

    flops = 2 * M * K * N
    bytes_accessed = (a_p.size * 2 + b_p.size * 2 + Mp * Np * 4
                      + (Mp * Np * 4 if has_res else 0))

    out = pl.pallas_call(
        functools.partial(_matmul_kernel, relu=relu, has_residual=has_res),
        out_shape=jax.ShapeDtypeStruct((Mp, Np), jnp.float32),
        grid_spec=pltpu.PrefetchScalarGridSpec(
            num_scalar_prefetch=0,
            grid=(Mp // TM, Np // TN, Kp // TK),
            in_specs=in_specs,
            out_specs=pl.BlockSpec((TM, TN), lambda i, j, k: (i, j)),
            scratch_shapes=[pltpu.VMEM((TM, TN), jnp.float32)],
        ),
        compiler_params=pltpu.CompilerParams(
            dimension_semantics=("parallel", "parallel", "arbitrary"),
            vmem_limit_bytes=_VMEM_LIMIT),
        cost_estimate=pl.CostEstimate(flops=flops, transcendentals=0,
                                      bytes_accessed=bytes_accessed),
    )(*inputs)
    return out[:M, :N]


_DIRECT_CONV_FAILED = False


def _direct_conv(x, w2, bias, kh, kw, dil, pad, Ho, Wo, relu):
    """Stride-1 kxk conv without HBM-materialized im2col.  Returns None if the direct
    kernel cannot be used (then the caller falls back to the im2col path)."""
    global _DIRECT_CONV_FAILED
    if _DIRECT_CONV_FAILED:
        return None
    N, H, W, cin = x.shape
    cout = w2.shape[1]
    xp = jnp.pad(x.astype(jnp.float32),
                 ((0, 0), (pad, pad), (pad, pad), (0, 0)))
    Hp, Wp = H + 2 * pad, W + 2 * pad
    wq = w2.astype(jnp.bfloat16)
    t = bias.reshape(1, cout).astype(jnp.float32)

    flops = 2 * N * Ho * Wo * kh * kw * cin * cout
    bytes_accessed = xp.size * 4 + wq.size * 2 + N * Ho * Wo * cout * 4
    try:
        out = pl.pallas_call(
            functools.partial(_direct_conv_kernel, kh=kh, kw=kw, dil=dil,
                              Ho=Ho, Wo=Wo, relu=relu),
            out_shape=jax.ShapeDtypeStruct((N, Ho * Wo, cout), jnp.float32),
            grid=(N,),
            in_specs=[
                pl.BlockSpec((1, Hp, Wp, cin), lambda n: (n, 0, 0, 0)),
                pl.BlockSpec((kh * kw * cin, cout), lambda n: (0, 0)),
                pl.BlockSpec((1, cout), lambda n: (0, 0)),
            ],
            out_specs=pl.BlockSpec((1, Ho * Wo, cout), lambda n: (n, 0, 0)),
            scratch_shapes=[pltpu.VMEM((Ho * Wo, cout), jnp.float32)],
            compiler_params=pltpu.CompilerParams(
                dimension_semantics=("parallel",),
                vmem_limit_bytes=_VMEM_LIMIT),
            cost_estimate=pl.CostEstimate(flops=flops, transcendentals=0,
                                          bytes_accessed=bytes_accessed),
        )(xp, wq, t)
        # Surface any Mosaic corner-case synchronously so the im2col fallback can take
        # over (correctness-preserving fallback, not an expected path).
        out = jax.block_until_ready(out)
    except Exception:
        _DIRECT_CONV_FAILED = True
        return None
    return out.reshape(N, Ho, Wo, cout)


def dropout2d(x, key, p=0.5):
    """Channel (Dropout2d) dropout, train-mode semantics: zero whole channels, 1/(1-p)."""
    N, H, W, C = x.shape
    HW = H * W
    TR = _row_chunk(HW)
    keep = jax.random.bernoulli(key, 1.0 - p, (N, 1, C)).astype(jnp.float32)
    mask = keep / (1.0 - p)
    x3 = x.reshape(N, HW, C)
    out = pl.pallas_call(
        _dropout2d_kernel,
        out_shape=jax.ShapeDtypeStruct((N, HW, C), jnp.float32),
        grid=(N, HW // TR),
        in_specs=[pl.BlockSpec((1, TR, C), lambda n, r: (n, r, 0)),
                  pl.BlockSpec((1, 1, C), lambda n, r: (n, 0, 0))],
        out_specs=pl.BlockSpec((1, TR, C), lambda n, r: (n, r, 0)),
        compiler_params=pltpu.CompilerParams(
            dimension_semantics=("parallel", "parallel"),
            vmem_limit_bytes=_VMEM_LIMIT),
    )(x3, mask)
    return out.reshape(N, H, W, C)


def global_avg_pool(x):
    N, H, W, C = x.shape
    HW = H * W
    TR = _row_chunk(HW)
    x3 = x.reshape(N, HW, C)
    out = pl.pallas_call(
        functools.partial(_gap_kernel, inv_hw=1.0 / HW),
        out_shape=jax.ShapeDtypeStruct((N, 1, C), jnp.float32),
        grid=(N, HW // TR),
        in_specs=[pl.BlockSpec((1, TR, C), lambda n, r: (n, r, 0))],
        out_specs=pl.BlockSpec((1, 1, C), lambda n, r: (n, 0, 0)),
        compiler_params=pltpu.CompilerParams(
            dimension_semantics=("parallel", "arbitrary"),
            vmem_limit_bytes=_VMEM_LIMIT),
    )(x3)
    return out.reshape(N, 1, 1, C)


# --------------------------------------------------------------------------
# Convolution dispatch (1x1 -> matmul, stride-1 kxk -> direct kernel,
# stride>1 kxk -> im2col fallback).  BN scale is folded into the weights here.
# --------------------------------------------------------------------------
def _im2col(x, kh, kw, stride, dilation, padding):
    N, H, W, C = x.shape
    xp = jnp.pad(x, ((0, 0), (padding, padding), (padding, padding), (0, 0)))
    Ho = (H + 2 * padding - dilation * (kh - 1) - 1) // stride + 1
    Wo = (W + 2 * padding - dilation * (kw - 1) - 1) // stride + 1
    patches = []
    for i in range(kh):
        for j in range(kw):
            patches.append(
                xp[:, i * dilation: i * dilation + stride * (Ho - 1) + 1: stride,
                      j * dilation: j * dilation + stride * (Wo - 1) + 1: stride, :])
    cols = jnp.stack(patches, axis=3)                     # (N,Ho,Wo,kh*kw,C)
    return cols.reshape(N * Ho * Wo, kh * kw * C), (N, Ho, Wo)


def conv_bn(x, w, scale, bias, stride=1, dilation=1, padding=0, relu=True,
            residual=None):
    """x: NHWC; w: (kh,kw,Cin,Cout).  Folded BN (scale into w, bias in epilogue),
    optional fused residual add + ReLU."""
    kh, kw, cin, cout = w.shape
    w2 = w.reshape(kh * kw * cin, cout) * scale[None, :]   # fold BN scale into weights

    if kh == 1 and kw == 1:
        xs = x if stride == 1 else x[:, ::stride, ::stride, :]
        N, Ho, Wo, _ = xs.shape
        res = None if residual is None else residual.reshape(N * Ho * Wo, cout)
        out = pallas_matmul(xs.reshape(N * Ho * Wo, cin), w2, bias, relu, residual=res)
        return out.reshape(N, Ho, Wo, cout)

    N, H, W, _ = x.shape
    Ho = (H + 2 * padding - dilation * (kh - 1) - 1) // stride + 1
    Wo = (W + 2 * padding - dilation * (kw - 1) - 1) // stride + 1

    if stride == 1 and Wo % 8 == 0 and residual is None:
        out = _direct_conv(x, w2, bias, kh, kw, dilation, padding, Ho, Wo, relu)
        if out is not None:
            return out

    # Fallback: materialized im2col (stem 7x7/s2, the two 3x3/s2 blocks, odd widths).
    cols, _ = _im2col(x, kh, kw, stride, dilation, padding)
    res = None if residual is None else residual.reshape(N * Ho * Wo, cout)
    out = pallas_matmul(cols, w2, bias, relu, residual=res)
    return out.reshape(N, Ho, Wo, cout)


# --------------------------------------------------------------------------
# Bilinear (align_corners=True) resize as ONE lane-dense Pallas matmul
# --------------------------------------------------------------------------
def _bilinear_matrix(out_size, in_size):
    o = jnp.arange(out_size, dtype=jnp.float32)
    if out_size == 1:
        src = jnp.zeros((1,), jnp.float32)
    else:
        src = o * (in_size - 1) / (out_size - 1)
    lo = jnp.floor(src).astype(jnp.int32)
    hi = jnp.minimum(lo + 1, in_size - 1)
    w_hi = src - lo.astype(jnp.float32)
    w_lo = 1.0 - w_hi
    rows = jnp.arange(out_size)
    A = jnp.zeros((out_size, in_size), jnp.float32)
    A = A.at[rows, lo].add(w_lo).at[rows, hi].add(w_hi)
    return A


def bilinear_upsample(x, Ho, Wo):
    """F.interpolate(mode='bilinear', align_corners=True) as a single matmul:
    (Ho*Wo, H*W) separable interpolation matrix @ (H*W, N*C)."""
    N, H, W, C = x.shape
    if (H, W) == (Ho, Wo):
        return x
    Ah = _bilinear_matrix(Ho, H)
    Aw = _bilinear_matrix(Wo, W)
    A = jnp.einsum('oh,pw->ophw', Ah, Aw).reshape(Ho * Wo, H * W)
    x2 = x.reshape(N, H * W, C).transpose(1, 0, 2).reshape(H * W, N * C)
    y = pallas_matmul(A, x2)                               # (Ho*Wo, N*C)
    return y.reshape(Ho, Wo, N, C).transpose(2, 0, 1, 3)


# --------------------------------------------------------------------------
# Deterministic parameter construction
# --------------------------------------------------------------------------
class ParamGen:
    def __init__(self, key):
        self._key = key

    def _next(self):
        self._key, k = jax.random.split(self._key)
        return k

    def conv(self, k, cin, cout):
        fan_in = k * k * cin
        return (jax.random.normal(self._next(), (k, k, cin, cout), jnp.float32)
                * jnp.sqrt(2.0 / fan_in))

    def conv_bn(self, k, cin, cout):
        # folded inference-mode BN: y = conv(x)*s + b
        return {"w": self.conv(k, cin, cout),
                "s": 1.0 + 0.05 * jax.random.normal(self._next(), (cout,), jnp.float32),
                "b": 0.05 * jax.random.normal(self._next(), (cout,), jnp.float32)}

    def vec(self, n):
        return 0.05 * jax.random.normal(self._next(), (n,), jnp.float32)


def make_params(key):
    pg = ParamGen(key)
    enc = {"stem": pg.conv_bn(7, 3, STEM_CH), "stages": []}
    # (planes, num_blocks, stride, per-block dilation)   replace_stride_with_dilation=[F,F,T]
    cfgs = [(16, 2, 1, [1, 1]),
            (32, 2, 2, [1, 1]),
            (64, 2, 2, [1, 1]),
            (128, 2, 1, [2, 4])]        # layer4: stride->dilation, multi_grid (1,2)*2
    in_ch = STEM_CH
    for planes, blocks, stride, dils in cfgs:
        out_ch = planes * 4
        blks = []
        for b in range(blocks):
            s = stride if b == 0 else 1
            blk = {"c1": pg.conv_bn(1, in_ch, planes),
                   "c2": pg.conv_bn(3, planes, planes),
                   "c3": pg.conv_bn(1, planes, out_ch),
                   "stride": s, "dil": dils[b]}
            if s != 1 or in_ch != out_ch:
                blk["down"] = pg.conv_bn(1, in_ch, out_ch)
            blks.append(blk)
            in_ch = out_ch
        enc["stages"].append(blks)

    f1_ch, feat2_ch = 64, 512
    dec = {"aspp0": pg.conv_bn(1, feat2_ch, INNER_PLANES),
           "aspp1": pg.conv_bn(3, feat2_ch, INNER_PLANES),
           "aspp2": pg.conv_bn(3, feat2_ch, INNER_PLANES),
           "aspp3": pg.conv_bn(3, feat2_ch, INNER_PLANES),
           "aspp_pool": pg.conv_bn(1, feat2_ch, INNER_PLANES),
           "head": pg.conv_bn(3, 5 * INNER_PLANES, INNER_PLANES),
           "low": pg.conv_bn(1, f1_ch, LOW_PLANES),
           "cls1": pg.conv_bn(3, INNER_PLANES + LOW_PLANES, INNER_PLANES),
           "cls2": pg.conv_bn(3, INNER_PLANES, INNER_PLANES),
           "cls_w": pg.conv(1, INNER_PLANES, NUM_CLASSES),
           "cls_b": pg.vec(NUM_CLASSES)}
    return {"enc": enc, "dec": dec}


# --------------------------------------------------------------------------
# Model forward
# --------------------------------------------------------------------------
def _cb(x, q, **kw):
    return conv_bn(x, q["w"], q["s"], q["b"], **kw)


def bottleneck(x, blk):
    identity = x
    out = _cb(x, blk["c1"], relu=True)
    out = _cb(out, blk["c2"], stride=blk["stride"], dilation=blk["dil"],
              padding=blk["dil"], relu=True)
    if "down" in blk:
        identity = _cb(x, blk["down"], stride=blk["stride"], relu=False)
    # residual add + ReLU fused into the c3 1x1-conv matmul epilogue
    return _cb(out, blk["c3"], relu=True, residual=identity)


def encoder_forward(p, x):
    x = _cb(x, p["stem"], stride=2, padding=3, relu=True)
    # TODO(synk): 3x3/stride-2 max-pool kept in XLA glue (window max, not an MXU hot path).
    x = jax.lax.reduce_window(x, -jnp.inf, jax.lax.max,
                              (1, 3, 3, 1), (1, 2, 2, 1),
                              ((0, 0), (1, 1), (1, 1), (0, 0)))
    feats = []
    for stage in p["stages"]:
        for blk in stage:
            x = bottleneck(x, blk)
        feats.append(x)
    return feats            # f1, f2, feat1, feat2


def decoder_forward(p, f1, f2, feat1, feat2):
    N, Hh, Wh, _ = feat2.shape
    branches = [_cb(feat2, p["aspp0"], relu=True)]
    for name, d in zip(("aspp1", "aspp2", "aspp3"), ASPP_DILATIONS):
        branches.append(_cb(feat2, p[name], dilation=d, padding=d, relu=True))
    pooled = global_avg_pool(feat2)                       # (N,1,1,C)
    pooled = _cb(pooled, p["aspp_pool"], relu=True)       # (N,1,1,256)
    branches.append(jnp.broadcast_to(pooled, (N, Hh, Wh, pooled.shape[-1])))
    aspp = jnp.concatenate(branches, axis=-1)             # (N,Hh,Wh,5*256)

    head = _cb(aspp, p["head"], padding=1, relu=True)
    low = _cb(f1, p["low"], relu=True)
    head_up = bilinear_upsample(head, low.shape[1], low.shape[2])
    fused = jnp.concatenate([head_up, low], axis=-1)
    y = _cb(fused, p["cls1"], padding=1, relu=True)
    y = _cb(y, p["cls2"], padding=1, relu=True)
    y = conv_bn(y, p["cls_w"], jnp.ones((NUM_CLASSES,), jnp.float32),
                p["cls_b"], relu=False)                   # final 1x1 conv with bias
    return y


def model_forward(params, x_nchw, drop_key, flag_use_fdrop=True):
    """ModelBuilder.forward: NCHW in, NCHW logits (num_classes=13) out."""
    h, w = x_nchw.shape[-2:]
    x = jnp.transpose(x_nchw, (0, 2, 3, 1)).astype(jnp.float32)   # NCHW -> NHWC
    f1, f2, feat1, feat2 = encoder_forward(params["enc"], x)
    if flag_use_fdrop:
        k1, k2 = jax.random.split(drop_key)
        f1 = dropout2d(f1, k1, 0.5)
        feat2 = dropout2d(feat2, k2, 0.5)
    outs = decoder_forward(params["dec"], f1, f2, feat1, feat2)
    outs = bilinear_upsample(outs, h, w)                  # bilinear, align_corners=True
    return jnp.transpose(outs, (0, 3, 1, 2))              # back to NCHW


# --------------------------------------------------------------------------
if __name__ == "__main__":
    key = jax.random.PRNGKey(0)
    pkey, xkey, dkey = jax.random.split(key, 3)
    params = make_params(pkey)
    # 128x128 input -> output-stride-8 features are 8x8/16x16/32x32 (lane/sublane friendly)
    x = jax.random.normal(xkey, (2, 3, 128, 128), jnp.float32)    # NCHW input, like PyTorch
    out = model_forward(params, x, dkey, flag_use_fdrop=True)
    out = jax.block_until_ready(out)
    assert out.shape == (2, NUM_CLASSES, 128, 128), out.shape
    assert bool(jnp.all(jnp.isfinite(out)))
    print("KERNEL_OK")
</pallas_src>

<mosaic_0001>
module attributes {stable_mosaic.version = 11 : i64} {
  func.func @_matmul_kernel(%arg0: i32, %arg1: i32, %arg2: i32, %arg3: memref<512x147xbf16, #tpu.memory_space<vmem>>, %arg4: memref<147x32xbf16, #tpu.memory_space<vmem>>, %arg5: memref<1x32xf32, #tpu.memory_space<vmem>>, %arg6: memref<512x32xf32, #tpu.memory_space<vmem>>, %arg7: memref<512x32xf32, #tpu.memory_space<vmem>>) attributes {dimension_semantics = [#tpu.dimension_semantics<parallel>, #tpu.dimension_semantics<parallel>, #tpu.dimension_semantics<arbitrary>], iteration_bounds = array<i64: 16, 1, 1>, scalar_prefetch = 0 : i64, scratch_operands = 1 : i64, tpu.core_type = #tpu.core_type<tc>, window_params = [{transform_indices = @transform_0, window_bounds = array<i64: 512, 147>}, {transform_indices = @transform_1, window_bounds = array<i64: 147, 32>}, {transform_indices = @transform_2, window_bounds = array<i64: 1, 32>}, {transform_indices = @transform_3, window_bounds = array<i64: 512, 32>}]} {
    %c0_i32 = arith.constant 0 : i32
    %0 = arith.cmpi eq, %arg2, %c0_i32 : i32
    %1 = arith.extui %0 : i1 to i32
    %c0_i32_0 = arith.constant 0 : i32
    %2 = arith.cmpi ne, %1, %c0_i32_0 : i32
    scf.if %2 {
      %cst_10 = arith.constant 0.000000e+00 : f32
      %12 = vector.broadcast %cst_10 : f32 to vector<512x32xf32>
      %c0_11 = arith.constant 0 : index
      %c0_12 = arith.constant 0 : index
      %13 = vector.load %arg7[%c0_11, %c0_12] : memref<512x32xf32, #tpu.memory_space<vmem>>, vector<512x32xf32>
      tpu.vector_store %arg7[%c0_11, %c0_12], %12 {strides = array<i32>} : memref<512x32xf32, #tpu.memory_space<vmem>>, vector<512x32xf32>,
    } else {
    }
    %c0 = arith.constant 0 : index
    %c0_1 = arith.constant 0 : index
    %3 = vector.load %arg7[%c0, %c0_1] : memref<512x32xf32, #tpu.memory_space<vmem>>, vector<512x32xf32>
    %c0_2 = arith.constant 0 : index
    %c0_3 = arith.constant 0 : index
    %4 = vector.load %arg3[%c0_2, %c0_3] : memref<512x147xbf16, #tpu.memory_space<vmem>>, vector<512x147xbf16>
    %c0_4 = arith.constant 0 : index
    %c0_5 = arith.constant 0 : index
    %5 = vector.load %arg4[%c0_4, %c0_5] : memref<147x32xbf16, #tpu.memory_space<vmem>>, vector<147x32xbf16>
    %cst = arith.constant dense<0.000000e+00> : vector<512x32xf32>
    %6 = tpu.matmul %4, %5, %cst {dimension_numbers = #tpu.dot_dimension_numbers<[1], [0], [0], [1], [0, 0, 1, 1], [], []>} : vector<512x147xbf16>, vector<147x32xbf16>, vector<512x32xf32> -> vector<512x32xf32>
    %7 = arith.addf %3, %6 : vector<512x32xf32>
    %c0_6 = arith.constant 0 : index
    %c0_7 = arith.constant 0 : index
    %8 = vector.load %arg7[%c0_6, %c0_7] : memref<512x32xf32, #tpu.memory_space<vmem>>, vector<512x32xf32>
    tpu.vector_store %arg7[%c0_6, %c0_7], %7 {strides = array<i32>} : memref<512x32xf32, #tpu.memory_space<vmem>>, vector<512x32xf32>,
    %c0_i32_8 = arith.constant 0 : i32
    %9 = arith.cmpi eq, %arg2, %c0_i32_8 : i32
    %10 = arith.extui %9 : i1 to i32
    %c0_i32_9 = arith.constant 0 : i32
    %11 = arith.cmpi ne, %10, %c0_i32_9 : i32
    scf.if %11 {
      %c0_10 = arith.constant 0 : index
      %c0_11 = arith.constant 0 : index
      %12 = vector.load %arg7[%c0_10, %c0_11] : memref<512x32xf32, #tpu.memory_space<vmem>>, vector<512x32xf32>
      %c0_12 = arith.constant 0 : index
      %c0_13 = arith.constant 0 : index
      %13 = vector.load %arg5[%c0_12, %c0_13] : memref<1x32xf32, #tpu.memory_space<vmem>>, vector<1x32xf32>
      %14 = vector.broadcast %13 : vector<1x32xf32> to vector<512x32xf32>
      %15 = arith.addf %12, %14 : vector<512x32xf32>
      %cst_14 = arith.constant 0.000000e+00 : f32
      %16 = vector.broadcast %cst_14 : f32 to vector<512x32xf32>
      %17 = arith.maximumf %15, %16 : vector<512x32xf32>
      %c0_15 = arith.constant 0 : index
      %c0_16 = arith.constant 0 : index
      %18 = vector.load %arg6[%c0_15, %c0_16] : memref<512x32xf32, #tpu.memory_space<vmem>>, vector<512x32xf32>
      tpu.vector_store %arg6[%c0_15, %c0_16], %17 {strides = array<i32>} : memref<512x32xf32, #tpu.memory_space<vmem>>, vector<512x32xf32>,
    } else {
    }
    return
  }
  func.func @transform_0(%arg0: i32, %arg1: i32, %arg2: i32) -> (i32, i32) {
    %c0_i32 = arith.constant 0 : i32
    return %arg0, %arg2 : i32, i32
  }
  func.func @transform_1(%arg0: i32, %arg1: i32, %arg2: i32) -> (i32, i32) {
    %c0_i32 = arith.constant 0 : i32
    return %arg2, %arg1 : i32, i32
  }
  func.func @transform_2(%arg0: i32, %arg1: i32, %arg2: i32) -> (i32, i32) {
    %c0_i32 = arith.constant 0 : i32
    %c0_i32_0 = arith.constant 0 : i32
    return %c0_i32, %arg1 : i32, i32
  }
  func.func @transform_3(%arg0: i32, %arg1: i32, %arg2: i32) -> (i32, i32) {
    %c0_i32 = arith.constant 0 : i32
    return %arg0, %arg1 : i32, i32
  }
}

</mosaic_0001>

<bundles_post_ra>
// kernel: tpu_custom_call.1
= control target key start
LH: loop header
LB: loop body
LE: loop exit
PB: predicated region body
PF: predicated region fallthrough
CT: control target
= control target key end

     0   :  { %s2273_s12 = smov 0   ;;  %s2275_s13 = smov 0   ;;  %s2994_s0 = inlined_call_operand.vmem [shape: bf16[8192,147], index: 0, kind: input, shape index: {}]   ;;  %s2995_s1 = inlined_call_operand.vmem [shape: bf16[147,32], index: 1, kind: input, shape index: {}]   ;;  %s2996_s2 = inlined_call_operand.vmem [shape: f32[1,32], index: 2, kind: input, shape index: {}]   ;;  %s2997_s3 = inlined_call_operand.vmem [shape: f32[8192,32], index: 3, kind: output, shape index: {}]  }
   0x1   :  { %s2277_s14 = smov 0  }
   0x2 LB: > { %s32_s15 = sadd.s32 1, %s2245_s13  ;;  %p1783_p0 = scmp.ge.s32.totalorder %s2249_s14, 1  ;;  %s2249_s14 = sphi %s2277_s14, %s13_s14   ;;  %s2245_s13 = sphi %s2275_s13, %s2999_s13   ;;  %s2241_s12 = sphi %s2273_s12, %s2998_s12  }
   0x3   : > { %p34_p1 = scmp.ge.s32.totalorder %s32_s15, 16  ;;  %p191_p2 = scmp.lt.s32.totalorder %s2249_s14, 17 }
   0x5   : > { %s3001_s15 = smov (%p34_p1, %s32_s15), 0  ;;  %p192_p3 = pnand %p1783_p0, %p191_p2 }
   0x6   : > { %s1784_s20 = sshll.u32 (!%p192_p3), %s2241_s12, 6 }
   0x7   : > { %195 = sbr.rel (%p192_p3) target bundleno = 441 (0x1b9), region = 32  ;;  %p236_p4 = scmp.lt.s32.totalorder (!%p192_p3), %s1784_s20, 1023 }
   0xc   : > { %v2187_v0 = vld [vmem:[%s2995_s1 + $0x38] sm:$0xff]  ;;  %v483_v1 = vld [vmem:[%s2995_s1 + $0x48] sm:$0x3]  ;;  %vm926_vm0 = vcmask 1040384   ;;  %vm927_vm1 = vcmask 1041408   ;;  %v2186_v3 = vld [vmem:[%s2995_s1 + $0x30] sm:$0xff] }
   0xd   : > { %v809_v2 = vunpack.c.l.b16 %v483_v1  ;;  %933 = vmatpush.bf16.msra.mxu0 %v2187_v0  ;;  %2189 = vmatpush.bf16.msra.mxu2 %v2187_v0  ;;  %v2251_v4 = vmov 65535   ;;  %s3003_s20 = smov (!%p236_p4, %s1784_s20), 1023  ;;  %v2185_v9 = vld [vmem:[%s2995_s1 + $0x28] sm:$0xff]  ;;  %v2188_v10 = vld [vmem:[%s2995_s1 + $0x40] sm:$0xff]  ;;  %vm829_vm2 = vcmask 154624   ;;  %v2183_v18 = vld [vmem:[%s2995_s1 + $0x18] sm:$0xff] }
   0xe   : > { %v928_v5 = vsel %vm926_vm0, 4294967295, %v2251_v4  ;;  %s2115_s25 = sshll.u32 %s3003_s20, 3  ;;  %v2184_v14 = vld [vmem:[%s2995_s1 + $0x20] sm:$0xff]  ;;  %v2182_v19 = vld [vmem:[%s2995_s1 + $0x10] sm:$0xff]  ;;  %v2181_v20 = vld [vmem:[%s2995_s1 + $0x8] sm:$0xff]  ;;  %vm272_vm3 = vcmask 261120  }
   0xf   : > { %v819_v6 = vpack.c.b16 %v809_v2, %v809_v2  ;;  %v929_v7 = vsel %vm927_vm1, %v928_v5, 0  ;;  %s2314_s30 = scalar_lea.vmem %s2994_s0, %s2115_s25  ;;  %v2180_v26 = vld [vmem:[%s2995_s1] sm:$0xff]  ;;  %s2555_s22 = scalar_lea.vmem %s2997_s3, %s2115_s25 }
  0x10   : > { %v2116_v11 = vld [vmem:[%s2314_s30 + $0x4] sm:$0xf]  ;;  %v1793_v12 = vld [vmem:[%s2314_s30 + $0x8] sm:$0xf0]  ;;  %v2150_v15 = vld [vmem:[%s2314_s30 + $0x114] sm:$0xf] }
  0x11   : > { %v931_v8 = vand.u32 %v929_v7, %v819_v6  ;;  %934 = vmatpush.bf16.msra.mxu0 %v2186_v3  ;;  %2190 = vmatpush.bf16.msra.mxu2 %v2186_v3  ;;  %v1796_v13 = vor.u32 %v2116_v11, %v1793_v12  ;;  %v1929_v16 = vld [vmem:[%s2314_s30 + $0x118] sm:$0xf0]  ;;  %v2118_v21 = vld [vmem:[%s2314_s30 + $0x14] sm:$0xf]  ;;  %v2152_v23 = vld [vmem:[%s2314_s30 + $0x124] sm:$0xf] }
  0x12   : > { %v1932_v17 = vor.u32 %v2150_v15, %v1929_v16  ;;  %v1801_v22 = vld [vmem:[%s2314_s30 + $0x18] sm:$0xf0]  ;;  %v1937_v24 = vld [vmem:[%s2314_s30 + $0x128] sm:$0xf0]  ;;  %v1791_v27 = vld [vmem:[%s2314_s30] sm:$0xf] }
  0x13   : > { %1108 = vmatpush.bf16.msra.mxu1 %v931_v8  ;;  %2197 = vmatpush.bf16.msra.mxu3 %v931_v8  ;;  %v1804_v25 = vor.u32 %v2118_v21, %v1801_v22  ;;  %v2117_v28 = vld [vmem:[%s2314_s30 + $0x4] sm:$0xf0]  ;;  %v1919_v29 = vld [vmem:[%s2314_s30 + $0x100] sm:$0xf]  ;;  %v1940_v31 = vor.u32 %v2152_v23, %v1937_v24  ;;  %v2120_v34 = vld [vmem:[%s2314_s30 + $0x24] sm:$0xf] }
  0x14   : > { %v2149_v30 = vld [vmem:[%s2314_s30 + $0x104] sm:$0xf0]  ;;  %v1792_v32 = vor.u32 %v2117_v28, %v1791_v27  ;;  %v1809_v35 = vld [vmem:[%s2314_s30 + $0x28] sm:$0xf0]  ;;  %v2154_v36 = vld [vmem:[%s2314_s30 + $0x134] sm:$0xf] }
  0x15   : > { %935 = vmatpush.bf16.msra.mxu0 %v2185_v9  ;;  %2191 = vmatpush.bf16.msra.mxu2 %v2185_v9  ;;  %v1920_v33 = vor.u32 %v2149_v30, %v1919_v29  ;;  %v1945_v37 = vld [vmem:[%s2314_s30 + $0x138] sm:$0xf0]  ;;  %v1812_v38 = vor.u32 %v2120_v34, %v1809_v35  ;;  %v1799_v39 = vld [vmem:[%s2314_s30 + $0x10] sm:$0xf]  ;;  %v2119_v40 = vld [vmem:[%s2314_s30 + $0x14] sm:$0xf0] }
  0x16   : > { %v1927_v41 = vld [vmem:[%s2314_s30 + $0x110] sm:$0xf]  ;;  %v2151_v42 = vld [vmem:[%s2314_s30 + $0x114] sm:$0xf0]  ;;  %v1948_v43 = vor.u32 %v2154_v36, %v1945_v37  ;;  %v1800_v44 = vor.u32 %v2119_v40, %v1799_v39  ;;  %v2122_v46 = vld [vmem:[%s2314_s30 + $0x34] sm:$0xf] }
  0x17   : > { %1109 = vmatpush.bf16.msra.mxu1 %v2188_v10  ;;  %2198 = vmatpush.bf16.msra.mxu3 %v2188_v10  ;;  %v1928_v45 = vor.u32 %v2151_v42, %v1927_v41  ;;  %v1817_v47 = vld [vmem:[%s2314_s30 + $0x38] sm:$0xf0]  ;;  %v2156_v48 = vld [vmem:[%s2314_s30 + $0x144] sm:$0xf]  ;;  %v1953_v49 = vld [vmem:[%s2314_s30 + $0x148] sm:$0xf0] }
  0x18   : > { %v1820_v50 = vor.u32 %v2122_v46, %v1817_v47  ;;  %v1807_v51 = vld [vmem:[%s2314_s30 + $0x20] sm:$0xf]  ;;  %v2121_v52 = vld [vmem:[%s2314_s30 + $0x24] sm:$0xf0]  ;;  %v1956_v55 = vor.u32 %v2156_v48, %v1953_v49  ;;  %v2124_v58 = vld [vmem:[%s2314_s30 + $0x44] sm:$0xf] }
  0x19   : > { %936 = vmatpush.bf16.msra.mxu0 %v2184_v14  ;;  %2192 = vmatpush.bf16.msra.mxu2 %v2184_v14  ;;  %v1935_v53 = vld [vmem:[%s2314_s30 + $0x120] sm:$0xf]  ;;  %v2153_v54 = vld [vmem:[%s2314_s30 + $0x124] sm:$0xf0]  ;;  %v1808_v56 = vor.u32 %v2121_v52, %v1807_v51  ;;  %v1825_v59 = vld [vmem:[%s2314_s30 + $0x48] sm:$0xf0] }
  0x1a   : > { %2081 = vmatmul.msk.bf16.vlgmr.msra.gmra.mxu1 %vm829_vm2, %v1796_v13  ;;  %2098 = vmatmul.msk.bf16.vlgmr.msra.gmra.mxu3 %vm829_vm2, %v1932_v17  ;;  %v1936_v57 = vor.u32 %v2153_v54, %v1935_v53  ;;  %v2158_v60 = vld [vmem:[%s2314_s30 + $0x154] sm:$0xf]  ;;  %v1961_v61 = vld [vmem:[%s2314_s30 + $0x158] sm:$0xf0]  ;;  %v1828_v62 = vor.u32 %v2124_v58, %v1825_v59  ;;  %v1815_v63 = vld [vmem:[%s2314_s30 + $0x30] sm:$0xf] }
  0x1b   : > { %v2123_v0 = vld [vmem:[%s2314_s30 + $0x34] sm:$0xf0]  ;;  %v1943_v1 = vld [vmem:[%s2314_s30 + $0x130] sm:$0xf]  ;;  %v1964_v3 = vor.u32 %v2158_v60, %v1961_v61  ;;  %v2126_v6 = vld [vmem:[%s2314_s30 + $0x54] sm:$0xf] }
  0x1c   : > { %v2155_v2 = vld [vmem:[%s2314_s30 + $0x134] sm:$0xf0]  ;;  %v1816_v4 = vor.u32 %v2123_v0, %v1815_v63  ;;  %v1833_v7 = vld [vmem:[%s2314_s30 + $0x58] sm:$0xf0]  ;;  %v2160_v8 = vld [vmem:[%s2314_s30 + $0x164] sm:$0xf] }
  0x1d   : > { %937 = vmatpush.bf16.msra.mxu0 %v2183_v18  ;;  %2193 = vmatpush.bf16.msra.mxu2 %v2183_v18  ;;  %v1944_v5 = vor.u32 %v2155_v2, %v1943_v1  ;;  %v1969_v9 = vld [vmem:[%s2314_s30 + $0x168] sm:$0xf0]  ;;  %v1836_v10 = vor.u32 %v2126_v6, %v1833_v7  ;;  %v1823_v11 = vld [vmem:[%s2314_s30 + $0x40] sm:$0xf]  ;;  %v2125_v12 = vld [vmem:[%s2314_s30 + $0x44] sm:$0xf0] }
  0x1e   : > { %v1951_v13 = vld [vmem:[%s2314_s30 + $0x140] sm:$0xf]  ;;  %v2157_v14 = vld [vmem:[%s2314_s30 + $0x144] sm:$0xf0]  ;;  %v1972_v15 = vor.u32 %v2160_v8, %v1969_v9  ;;  %v1824_v16 = vor.u32 %v2125_v12, %v1823_v11  ;;  %v2128_v18 = vld [vmem:[%s2314_s30 + $0x64] sm:$0xf] }
  0x1f   : > { %v1952_v17 = vor.u32 %v2157_v14, %v1951_v13  ;;  %v1977_v21 = vld [vmem:[%s2314_s30 + $0x178] sm:$0xf0]  ;;  %v1831_v23 = vld [vmem:[%s2314_s30 + $0x50] sm:$0xf]  ;;  %v2127_v24 = vld [vmem:[%s2314_s30 + $0x54] sm:$0xf0] }
  0x20   : > { %v1832_v28 = vor.u32 %v2127_v24, %v1831_v23  ;;  %v2130_v30 = vld [vmem:[%s2314_s30 + $0x74] sm:$0xf]  ;;  %v1839_v35 = vld [vmem:[%s2314_s30 + $0x60] sm:$0xf]  ;;  %v2129_v36 = vld [vmem:[%s2314_s30 + $0x64] sm:$0xf0] }
  0x21   : > { %938 = vmatpush.bf16.msra.mxu0 %v2182_v19  ;;  %2194 = vmatpush.bf16.msra.mxu2 %v2182_v19  ;;  %v1841_v19 = vld [vmem:[%s2314_s30 + $0x68] sm:$0xf0]  ;;  %v2252_v37 = vmov 0.0   ;;  %v2161_v39 = vld [vmem:[%s2314_s30 + $0x164] sm:$0xf0]  ;;  %v1840_v41 = vor.u32 %v2129_v36, %v1839_v35 }
  0x22   : > { %v1844_v22 = vor.u32 %v2128_v18, %v1841_v19  ;;  %273 = vst.msk [vmem:[#allocation2] sm:$0xff] %vm272_vm3, %v2252_v37  ;;  %v1847_v46 = vld [vmem:[%s2314_s30 + $0x70] sm:$0xf]  ;;  %v2131_v47 = vld [vmem:[%s2314_s30 + $0x74] sm:$0xf0] }
  0x23   : > { %274 = vst.msk [vmem:[#allocation2 + $0x8] sm:$0xff] %vm272_vm3, %v2252_v37  ;;  %v1975_v49 = vld [vmem:[%s2314_s30 + $0x170] sm:$0xf]  ;;  %v1848_v51 = vor.u32 %v2131_v47, %v1847_v46  ;;  %v2134_v54 = vld [vmem:[%s2314_s30 + $0x94] sm:$0xf] }
  0x24   : > { %275 = vst.msk [vmem:[#allocation2 + $0x10] sm:$0xff] %vm272_vm3, %v2252_v37  ;;  %v1855_v60 = vld [vmem:[%s2314_s30 + $0x80] sm:$0xf]  ;;  %v2133_v61 = vld [vmem:[%s2314_s30 + $0x84] sm:$0xf0] }
  0x25   : > { %939 = vmatpush.bf16.msra.mxu0 %v2181_v20  ;;  %2195 = vmatpush.bf16.msra.mxu2 %v2181_v20  ;;  %v2162_v20 = vld [vmem:[%s2314_s30 + $0x174] sm:$0xf]  ;;  %276 = vst.msk [vmem:[#allocation2 + $0x18] sm:$0xff] %vm272_vm3, %v2252_v37  ;;  %v1983_v63 = vld [vmem:[%s2314_s30 + $0x180] sm:$0xf]  ;;  %v1856_v1 = vor.u32 %v2133_v61, %v1855_v60 }
  0x26   : > { %v1980_v27 = vor.u32 %v2162_v20, %v1977_v21  ;;  %277 = vst.msk [vmem:[#allocation2 + $0x20] sm:$0xff] %vm272_vm3, %v2252_v37  ;;  %v2165_v0 = vld [vmem:[%s2314_s30 + $0x184] sm:$0xf0]  ;;  %v2518_v9 = vld [vmem:[%s2996_s2] ss:$0 sm:$0xff] }
  0x27   : > { %278 = vst.msk [vmem:[#allocation2 + $0x28] sm:$0xff] %vm272_vm3, %v2252_v37  ;;  %v2136_v13 = vld [vmem:[%s2314_s30 + $0xa4] sm:$0xf]  ;;  %v1873_v14 = vld [vmem:[%s2314_s30 + $0xa8] sm:$0xf0] }
  0x28   : > { %279 = vst.msk [vmem:[#allocation2 + $0x30] sm:$0xff] %vm272_vm3, %v2252_v37  ;;  %v1876_v19 = vor.u32 %v2136_v13, %v1873_v14  ;;  %v1863_v20 = vld [vmem:[%s2314_s30 + $0x90] sm:$0xf]  ;;  %v2135_v21 = vld [vmem:[%s2314_s30 + $0x94] sm:$0xf0] }
  0x29   : > { %940 = vmatpush.bf16.msra.mxu0 %v2180_v26  ;;  %2196 = vmatpush.bf16.msra.mxu2 %v2180_v26  ;;  %v2159_v26 = vld [vmem:[%s2314_s30 + $0x154] sm:$0xf0]  ;;  %280 = vst.msk [vmem:[#allocation2 + $0x38] sm:$0xff] %vm272_vm3, %v2252_v37  ;;  %v1991_v24 = vld [vmem:[%s2314_s30 + $0x190] sm:$0xf] }
  0x2a   : > { %2082 = vmatmul.msk.bf16.gmra.mxu1 %vm829_vm2, %v1804_v25  ;;  %2099 = vmatmul.msk.bf16.gmra.mxu3 %vm829_vm2, %v1940_v31  ;;  %v1959_v25 = vld [vmem:[%s2314_s30 + $0x150] sm:$0xf]  ;;  %v1849_v31 = vld [vmem:[%s2314_s30 + $0x78] sm:$0xf0]  ;;  %281 = vst.msk [vmem:[#allocation2 + $0x40] sm:$0xff] %vm272_vm3, %v2252_v37 }
  0x2b   : > { %v1960_v29 = vor.u32 %v2159_v26, %v1959_v25  ;;  %v1852_v34 = vor.u32 %v2130_v30, %v1849_v31  ;;  %282 = vst.msk [vmem:[#allocation2 + $0x48] sm:$0xff] %vm272_vm3, %v2252_v37  ;;  %v2167_v25 = vld [vmem:[%s2314_s30 + $0x194] sm:$0xf0]  ;;  %v2170_v46 = vld [vmem:[%s2314_s30 + $0x1b4] sm:$0xf] }
  0x2c   : > { %941 = vmatmul.bf16.vlgmr.msra.gmra.mxu0 %v1792_v32  ;;  %1021 = vmatmul.bf16.vlgmr.msra.gmra.mxu2 %v1920_v33  ;;  %v2164_v32 = vld [vmem:[%s2314_s30 + $0x184] sm:$0xf]  ;;  %v1985_v33 = vld [vmem:[%s2314_s30 + $0x188] sm:$0xf0]  ;;  %283 = vst.msk [vmem:[#allocation2 + $0x50] sm:$0xff] %vm272_vm3, %v2252_v37  ;;  %v1992_v31 = vor.u32 %v2167_v25, %v1991_v24 }
  0x2d   : > { %v1988_v40 = vor.u32 %v2164_v32, %v1985_v33  ;;  %284 = vst.msk [vmem:[#allocation2 + $0x58] sm:$0xff] %vm272_vm3, %v2252_v37  ;;  %v2009_v47 = vld [vmem:[%s2314_s30 + $0x1b8] sm:$0xf0]  ;;  %v1889_v24 = vld [vmem:[%s2314_s30 + $0xc8] sm:$0xf0] }
  0x2e   : > { %285 = vst.msk [vmem:[#allocation2 + $0x60] sm:$0xff] %vm272_vm3, %v2252_v37 }
  0x2f   : > { %286 = vst.msk [vmem:[#allocation2 + $0x68] sm:$0xff] %vm272_vm3, %v2252_v37 }
  0x30   : > { %287 = vst.msk [vmem:[#allocation2 + $0x70] sm:$0xff] %vm272_vm3, %v2252_v37 }
  0x31   : > { %288 = vst.msk [vmem:[#allocation2 + $0x78] sm:$0xff] %vm272_vm3, %v2252_v37 }
  0x32   : > { %289 = vst.msk [vmem:[#allocation2 + $0x80] sm:$0xff] %vm272_vm3, %v2252_v37 }
  0x33   : > { %290 = vst.msk [vmem:[#allocation2 + $0x88] sm:$0xff] %vm272_vm3, %v2252_v37 }
  0x34   : > { %291 = vst.msk [vmem:[#allocation2 + $0x90] sm:$0xff] %vm272_vm3, %v2252_v37 }
  0x35   : > { %292 = vst.msk [vmem:[#allocation2 + $0x98] sm:$0xff] %vm272_vm3, %v2252_v37 }
  0x36   : > { %293 = vst.msk [vmem:[#allocation2 + $0xa0] sm:$0xff] %vm272_vm3, %v2252_v37 }
  0x37   : > { %294 = vst.msk [vmem:[#allocation2 + $0xa8] sm:$0xff] %vm272_vm3, %v2252_v37 }
  0x38   : > { %295 = vst.msk [vmem:[#allocation2 + $0xb0] sm:$0xff] %vm272_vm3, %v2252_v37 }
  0x39   : > { %296 = vst.msk [vmem:[#allocation2 + $0xb8] sm:$0xff] %vm272_vm3, %v2252_v37 }
  0x3a   : > { %2083 = vmatmul.msk.bf16.gmra.mxu1 %vm829_vm2, %v1812_v38  ;;  %2100 = vmatmul.msk.bf16.gmra.mxu3 %vm829_vm2, %v1948_v43  ;;  %v1967_v38 = vld [vmem:[%s2314_s30 + $0x160] sm:$0xf]  ;;  %v2132_v43 = vld [vmem:[%s2314_s30 + $0x84] sm:$0xf]  ;;  %297 = vst.msk [vmem:[#allocation2 + $0xc0] sm:$0xff] %vm272_vm3, %v2252_v37 }
  0x3b   : > { %v1968_v42 = vor.u32 %v2161_v39, %v1967_v38  ;;  %298 = vst.msk [vmem:[#allocation2 + $0xc8] sm:$0xff] %vm272_vm3, %v2252_v37  ;;  %v339_v39 = vld [vmem:[#allocation2 + $0x10] sm:$0xff] }
  0x3c   : > { %946 = vmatmul.bf16.gmra.mxu0 %v1800_v44  ;;  %1026 = vmatmul.bf16.gmra.mxu2 %v1928_v45  ;;  %v1857_v44 = vld [vmem:[%s2314_s30 + $0x88] sm:$0xf0]  ;;  %299 = vst.msk [vmem:[#allocation2 + $0xd0] sm:$0xff] %vm272_vm3, %v2252_v37 }
  0x3d   : > { %v1860_v45 = vor.u32 %v2132_v43, %v1857_v44  ;;  %300 = vst.msk [vmem:[#allocation2 + $0xd8] sm:$0xff] %vm272_vm3, %v2252_v37  ;;  %v1881_v43 = vld [vmem:[%s2314_s30 + $0xb8] sm:$0xf0] }
  0x3e   : > { %301 = vst.msk [vmem:[#allocation2 + $0xe0] sm:$0xff] %vm272_vm3, %v2252_v37 }
  0x3f   : > { %302 = vst.msk [vmem:[#allocation2 + $0xe8] sm:$0xff] %vm272_vm3, %v2252_v37 }
  0x40   : > { %303 = vst.msk [vmem:[#allocation2 + $0xf0] sm:$0xff] %vm272_vm3, %v2252_v37 }
  0x41   : > { %304 = vst.msk [vmem:[#allocation2 + $0xf8] sm:$0xff] %vm272_vm3, %v2252_v37 }
  0x42   : > { %305 = vst.msk [vmem:[#allocation2 + $0x100] sm:$0xff] %vm272_vm3, %v2252_v37 }
  0x43   : > { %306 = vst.msk [vmem:[#allocation2 + $0x108] sm:$0xff] %vm272_vm3, %v2252_v37 }
  0x44   : > { %307 = vst.msk [vmem:[#allocation2 + $0x110] sm:$0xff] %vm272_vm3, %v2252_v37 }
  0x45   : > { %308 = vst.msk [vmem:[#allocation2 + $0x118] sm:$0xff] %vm272_vm3, %v2252_v37 }
  0x46   : > { %309 = vst.msk [vmem:[#allocation2 + $0x120] sm:$0xff] %vm272_vm3, %v2252_v37 }
  0x47   : > { %310 = vst.msk [vmem:[#allocation2 + $0x128] sm:$0xff] %vm272_vm3, %v2252_v37 }
  0x48   : > { %311 = vst.msk [vmem:[#allocation2 + $0x130] sm:$0xff] %vm272_vm3, %v2252_v37 }
  0x49   : > { %312 = vst.msk [vmem:[#allocation2 + $0x138] sm:$0xff] %vm272_vm3, %v2252_v37 }
  0x4a   : > { %2084 = vmatmul.msk.bf16.gmra.mxu1 %vm829_vm2, %v1820_v50  ;;  %2101 = vmatmul.msk.bf16.gmra.mxu3 %vm829_vm2, %v1956_v55  ;;  %v2163_v50 = vld [vmem:[%s2314_s30 + $0x174] sm:$0xf0]  ;;  %v1865_v55 = vld [vmem:[%s2314_s30 + $0x98] sm:$0xf0]  ;;  %313 = vst.msk [vmem:[#allocation2 + $0x140] sm:$0xff] %vm272_vm3, %v2252_v37 }
  0x4b   : > { %v1976_v52 = vor.u32 %v2163_v50, %v1975_v49  ;;  %v1868_v59 = vor.u32 %v2134_v54, %v1865_v55  ;;  %314 = vst.msk [vmem:[#allocation2 + $0x148] sm:$0xff] %vm272_vm3, %v2252_v37  ;;  %v371_v44 = vld [vmem:[#allocation2 + $0x110] sm:$0xff]  ;;  %v340_v49 = vld [vmem:[#allocation2 + $0x18] sm:$0xff]  ;;  %v2012_v50 = vor.u32 %v2170_v46, %v2009_v47  ;;  %v1871_v54 = vld [vmem:[%s2314_s30 + $0xa0] sm:$0xf] }
  0x4c   : > { %951 = vmatmul.bf16.gmra.mxu0 %v1808_v56  ;;  %1031 = vmatmul.bf16.gmra.mxu2 %v1936_v57  ;;  %v2166_v56 = vld [vmem:[%s2314_s30 + $0x194] sm:$0xf]  ;;  %v1993_v57 = vld [vmem:[%s2314_s30 + $0x198] sm:$0xf0]  ;;  %315 = vst.msk [vmem:[#allocation2 + $0x150] sm:$0xff] %vm272_vm3, %v2252_v37 }
  0x4d   : > { %v1996_v58 = vor.u32 %v2166_v56, %v1993_v57  ;;  %316 = vst.msk [vmem:[#allocation2 + $0x158] sm:$0xff] %vm272_vm3, %v2252_v37  ;;  %v2137_v55 = vld [vmem:[%s2314_s30 + $0xa4] sm:$0xf0]  ;;  %v372_v60 = vld [vmem:[#allocation2 + $0x118] sm:$0xff]  ;;  %v373_v14 = vld [vmem:[#allocation2 + $0x120] sm:$0xff] }
  0x4e   : > { %317 = vst.msk [vmem:[#allocation2 + $0x160] sm:$0xff] %vm272_vm3, %v2252_v37  ;;  %v2007_v46 = vld [vmem:[%s2314_s30 + $0x1b0] sm:$0xf]  ;;  %v2171_v47 = vld [vmem:[%s2314_s30 + $0x1b4] sm:$0xf0] }
  0x4f   : > { %318 = vst.msk [vmem:[#allocation2 + $0x168] sm:$0xff] %vm272_vm3, %v2252_v37 }
  0x50   : > { %319 = vst.msk [vmem:[#allocation2 + $0x170] sm:$0xff] %vm272_vm3, %v2252_v37 }
  0x51   : > { %320 = vst.msk [vmem:[#allocation2 + $0x178] sm:$0xff] %vm272_vm3, %v2252_v37 }
  0x52   : > { %321 = vst.msk [vmem:[#allocation2 + $0x180] sm:$0xff] %vm272_vm3, %v2252_v37 }
  0x53   : > { %322 = vst.msk [vmem:[#allocation2 + $0x188] sm:$0xff] %vm272_vm3, %v2252_v37 }
  0x54   : > { %323 = vst.msk [vmem:[#allocation2 + $0x190] sm:$0xff] %vm272_vm3, %v2252_v37 }
  0x55   : > { %324 = vst.msk [vmem:[#allocation2 + $0x198] sm:$0xff] %vm272_vm3, %v2252_v37 }
  0x56   : > { %325 = vst.msk [vmem:[#allocation2 + $0x1a0] sm:$0xff] %vm272_vm3, %v2252_v37 }
  0x57   : > { %326 = vst.msk [vmem:[#allocation2 + $0x1a8] sm:$0xff] %vm272_vm3, %v2252_v37 }
  0x58   : > { %327 = vst.msk [vmem:[#allocation2 + $0x1b0] sm:$0xff] %vm272_vm3, %v2252_v37 }
  0x59   : > { %328 = vst.msk [vmem:[#allocation2 + $0x1b8] sm:$0xff] %vm272_vm3, %v2252_v37 }
  0x5a   : > { %2085 = vmatmul.msk.bf16.gmra.mxu1 %vm829_vm2, %v1828_v62  ;;  %2102 = vmatmul.msk.bf16.gmra.mxu3 %vm829_vm2, %v1964_v3  ;;  %v337_v3 = vld [vmem:[#allocation2] sm:$0xff]  ;;  %329 = vst.msk [vmem:[#allocation2 + $0x1c0] sm:$0xff] %vm272_vm3, %v2252_v37 }
  0x5b   : > { %330 = vst.msk [vmem:[#allocation2 + $0x1c8] sm:$0xff] %vm272_vm3, %v2252_v37 }
  0x5c   : > { %956 = vmatmul.bf16.gmra.mxu0 %v1816_v4  ;;  %1036 = vmatmul.bf16.gmra.mxu2 %v1944_v5  ;;  %v1984_v5 = vor.u32 %v2165_v0, %v1983_v63  ;;  %331 = vst.msk [vmem:[#allocation2 + $0x1d0] sm:$0xff] %vm272_vm3, %v2252_v37 }
  0x5d   : > { %332 = vst.msk [vmem:[#allocation2 + $0x1d8] sm:$0xff] %vm272_vm3, %v2252_v37 }
  0x5e   : > { %333 = vst.msk [vmem:[#allocation2 + $0x1e0] sm:$0xff] %vm272_vm3, %v2252_v37 }
  0x5f   : > { %334 = vst.msk [vmem:[#allocation2 + $0x1e8] sm:$0xff] %vm272_vm3, %v2252_v37 }
  0x60   : > { %335 = vst.msk [vmem:[#allocation2 + $0x1f0] sm:$0xff] %vm272_vm3, %v2252_v37 }
  0x61   : > { %336 = vst.msk [vmem:[#allocation2 + $0x1f8] sm:$0xff] %vm272_vm3, %v2252_v37  ;;  %v341_v37 = vld [vmem:[#allocation2 + $0x20] sm:$0xff] }
  0x6a   : > { %2086 = vmatmul.msk.bf16.gmra.mxu1 %vm829_vm2, %v1836_v10  ;;  %2103 = vmatmul.msk.bf16.gmra.mxu3 %vm829_vm2, %v1972_v15  ;;  %v2168_v15 = vld [vmem:[%s2314_s30 + $0x1a4] sm:$0xf] }
  0x6c   : > { %961 = vmatmul.bf16.gmra.mxu0 %v1824_v16  ;;  %1041 = vmatmul.bf16.gmra.mxu2 %v1952_v17  ;;  %v2001_v16 = vld [vmem:[%s2314_s30 + $0x1a8] sm:$0xf0] }
  0x6d   : > { %v2004_v17 = vor.u32 %v2168_v15, %v2001_v16  ;;  %v342_v16 = vld [vmem:[#allocation2 + $0x28] sm:$0xff] }
  0x7a   : > { %2087 = vmatmul.msk.bf16.gmra.mxu1 %vm829_vm2, %v1844_v22  ;;  %2104 = vmatmul.msk.bf16.gmra.mxu3 %vm829_vm2, %v1980_v27 }
  0x7c   : > { %966 = vmatmul.bf16.gmra.mxu0 %v1832_v28  ;;  %1046 = vmatmul.bf16.gmra.mxu2 %v1960_v29  ;;  %v1864_v28 = vor.u32 %v2135_v21, %v1863_v20 }
  0x8a   : > { %2088 = vmatmul.msk.bf16.gmra.mxu1 %vm829_vm2, %v1852_v34  ;;  %2105 = vmatmul.msk.bf16.gmra.mxu3 %vm829_vm2, %v1988_v40  ;;  %v338_v34 = vld [vmem:[#allocation2 + $0x8] sm:$0xff] }
  0x8c   : > { %971 = vmatmul.bf16.gmra.mxu0 %v1840_v41  ;;  %1051 = vmatmul.bf16.gmra.mxu2 %v1968_v42  ;;  %v2138_v42 = vld [vmem:[%s2314_s30 + $0xb4] sm:$0xf] }
  0x97   : > { %v1111_v48 = vpop.f32.mrf.mxu1 }
  0x9a   : > { %2089 = vmatmul.msk.bf16.gmra.mxu1 %vm829_vm2, %v1860_v45  ;;  %2106 = vmatmul.msk.bf16.gmra.mxu3 %vm829_vm2, %v1996_v58  ;;  %v1999_v58 = vld [vmem:[%s2314_s30 + $0x1a0] sm:$0xf] }
  0x9c   : > { %976 = vmatmul.bf16.gmra.mxu0 %v1848_v51  ;;  %1056 = vmatmul.bf16.gmra.mxu2 %v1976_v52 }
  0x9d   : > { %v2499_v2 = vpop.f32.mrf.mxu3 }
  0x9f   : > { %v2464_v53 = vpop.f32.mrf.mxu1 }
  0xa5   : > { %v2524_v11 = vpop.f32.mrf.mxu3 }
  0xa7   : > { %v2489_v62 = vpop.f32.mrf.mxu1 }
  0xa9   : > { %v942_v4 = vpop.f32.mrf.mxu0 }
  0xaa   : > { %2090 = vmatmul.msk.bf16.gmra.mxu1 %vm829_vm2, %v1868_v59  ;;  %v1112_v6 = vadd.f32 %v1111_v48, %v942_v4  ;;  %2107 = vmatmul.msk.bf16.gmra.mxu3 %vm829_vm2, %v2004_v17  ;;  %v2169_v59 = vld [vmem:[%s2314_s30 + $0x1a4] sm:$0xf0] }
  0xac   : > { %v1271_v7 = vadd.f32 %v1112_v6, %v337_v3  ;;  %981 = vmatmul.bf16.gmra.mxu0 %v1856_v1  ;;  %1061 = vmatmul.bf16.gmra.mxu2 %v1984_v5 }
  0xad   : > { %v2563_v29 = vpop.f32.mrf.mxu3 }
  0xae   : > { %1336 = vst.msk [vmem:[#allocation2] sm:$0xff] %vm272_vm3, %v1271_v7 }
  0xaf   : > { %v1118_v8 = vpop.f32.mrf.mxu1  ;;  %v2522_v10 = vpop.f32.mrf.mxu2 }
  0xb1   : > { %v944_v12 = vpop.f32.mrf.mxu0 }
  0xb2   : > { %v1114_v33 = vadd.f32 %v2464_v53, %v944_v12  ;;  %v1884_v53 = vor.u32 %v2138_v42, %v1881_v43  ;;  %v1879_v42 = vld [vmem:[%s2314_s30 + $0xb0] sm:$0xf]  ;;  %v2139_v43 = vld [vmem:[%s2314_s30 + $0xb4] sm:$0xf0] }
  0xb4   : > { %v1272_v48 = vadd.f32 %v1114_v33, %v338_v34 }
  0xb5   : > { %v1403_v18 = vld [vmem:[#allocation2] sm:$0xff]  ;;  %v2586_v38 = vpop.f32.mrf.mxu3 }
  0xb6   : > { %v1471_v22 = vadd.f32 %v2518_v9, %v1403_v18  ;;  %1337 = vst.msk [vmem:[#allocation2 + $0x8] sm:$0xff] %vm272_vm3, %v1272_v48 }
  0xb7   : > { %v2546_v23 = vpop.f32.mrf.mxu1  ;;  %v2561_v27 = vpop.f32.mrf.mxu2 }
  0xb8   : > { %v1535_v26 = vmax.f32 %v1471_v22, 0.0 }
  0xb9   : > { %v947_v30 = vpop.f32.mrf.mxu0 }
  0xba   : > { %2091 = vmatmul.msk.bf16.gmra.mxu1 %vm829_vm2, %v1876_v19  ;;  %1599 = vst.msk [vmem:[%s2555_s22] sm:$0xff] %vm272_vm3, %v1535_v26  ;;  %v1117_v35 = vadd.f32 %v2489_v62, %v947_v30  ;;  %2108 = vmatmul.msk.bf16.gmra.mxu3 %vm829_vm2, %v2012_v50  ;;  %v1872_v62 = vor.u32 %v2137_v55, %v1871_v54  ;;  %v2172_v30 = vld [vmem:[%s2314_s30 + $0x1c4] sm:$0xf]  ;;  %v374_v50 = vld [vmem:[#allocation2 + $0x128] sm:$0xff]  ;;  %v343_v55 = vld [vmem:[#allocation2 + $0x30] sm:$0xff] }
  0xbc   : > { %986 = vmatmul.bf16.gmra.mxu0 %v1864_v28  ;;  %1066 = vmatmul.bf16.gmra.mxu2 %v1992_v31  ;;  %v1273_v51 = vadd.f32 %v1117_v35, %v339_v39  ;;  %v2017_v31 = vld [vmem:[%s2314_s30 + $0x1c8] sm:$0xf0] }
  0xbd   : > { %v2614_v63 = vpop.f32.mrf.mxu3  ;;  %v1404_v6 = vld [vmem:[#allocation2 + $0x8] sm:$0xff] }
  0xbe   : > { %1338 = vst.msk [vmem:[#allocation2 + $0x10] sm:$0xff] %vm272_vm3, %v1273_v51 }
  0xbf   : > { %v2578_v32 = vpop.f32.mrf.mxu1  ;;  %v1027_v36 = vpop.f32.mrf.mxu2 }
  0xc0   : > { %v1197_v40 = vadd.f32 %v2499_v2, %v1027_v36  ;;  %v2000_v2 = vor.u32 %v2169_v59, %v1999_v58  ;;  %v2008_v58 = vor.u32 %v2171_v47, %v2007_v46 }
  0xc1   : > { %v949_v41 = vpop.f32.mrf.mxu0 }
  0xc2   : > { %v1119_v45 = vadd.f32 %v1118_v8, %v949_v41  ;;  %v1305_v52 = vadd.f32 %v1197_v40, %v371_v44  ;;  %v1472_v8 = vadd.f32 %v2518_v9, %v1404_v6  ;;  %v344_v6 = vld [vmem:[#allocation2 + $0x38] sm:$0xff] }
  0xc4   : > { %v1274_v56 = vadd.f32 %v1119_v45, %v340_v49  ;;  %1370 = vst.msk [vmem:[#allocation2 + $0x110] sm:$0xff] %vm272_vm3, %v1305_v52  ;;  %v1536_v18 = vmax.f32 %v1472_v8, 0.0  ;;  %v1880_v52 = vor.u32 %v2139_v43, %v1879_v42 }
  0xc5   : > { %v2627_v17 = vpop.f32.mrf.mxu3 }
  0xc6   : > { %1339 = vst.msk [vmem:[#allocation2 + $0x18] sm:$0xff] %vm272_vm3, %v1274_v56 }
  0xc7   : > { %v2608_v57 = vpop.f32.mrf.mxu1  ;;  %v1029_v61 = vpop.f32.mrf.mxu2  ;;  %1600 = vst.msk [vmem:[%s2555_s22 + $0x8] sm:$0xff] %vm272_vm3, %v1536_v18 }
  0xc8   : > { %v1199_v0 = vadd.f32 %v2524_v11, %v1029_v61  ;;  %v1405_v11 = vld [vmem:[#allocation2 + $0x10] sm:$0xff] }
  0xc9   : > { %v952_v1 = vpop.f32.mrf.mxu0  ;;  %v1473_v12 = vadd.f32 %v2518_v9, %v1405_v11  ;;  %v2142_v11 = vld [vmem:[%s2314_s30 + $0xd4] sm:$0xf] }
  0xca   : > { %2092 = vmatmul.msk.bf16.gmra.mxu1 %vm829_vm2, %v1884_v53  ;;  %v1122_v3 = vadd.f32 %v2546_v23, %v952_v1  ;;  %v1306_v4 = vadd.f32 %v1199_v0, %v372_v60  ;;  %v2140_v23 = vld [vmem:[%s2314_s30 + $0xc4] sm:$0xf]  ;;  %v375_v1 = vld [vmem:[#allocation2 + $0x130] sm:$0xff] }
  0xcb   : > { %v1437_v13 = vld [vmem:[#allocation2 + $0x110] sm:$0xff]  ;;  %v1537_v25 = vmax.f32 %v1473_v12, 0.0  ;;  %v1892_v41 = vor.u32 %v2140_v23, %v1889_v24  ;;  %v1897_v12 = vld [vmem:[%s2314_s30 + $0xd8] sm:$0xf0]  ;;  %v2141_v24 = vld [vmem:[%s2314_s30 + $0xc4] sm:$0xf0] }
  0xcc   : > { %v1275_v5 = vadd.f32 %v1122_v3, %v341_v37  ;;  %991 = vmatmul.bf16.gmra.mxu0 %v1872_v62  ;;  %1371 = vst.msk [vmem:[#allocation2 + $0x118] sm:$0xff] %vm272_vm3, %v1306_v4  ;;  %1071 = vmatmul.bf16.gmra.mxu2 %v2000_v2  ;;  %v1505_v19 = vadd.f32 %v2518_v9, %v1437_v13 }
  0xcd   : > { %v1406_v20 = vld [vmem:[#allocation2 + $0x18] sm:$0xff]  ;;  %1601 = vst.msk [vmem:[%s2555_s22 + $0x10] sm:$0xff] %vm272_vm3, %v1537_v25  ;;  %v2656_v53 = vpop.f32.mrf.mxu3  ;;  %v1900_v23 = vor.u32 %v2142_v11, %v1897_v12  ;;  %v2023_v12 = vld [vmem:[%s2314_s30 + $0x1d0] sm:$0xf] }
  0xce   : > { %1340 = vst.msk [vmem:[#allocation2 + $0x20] sm:$0xff] %vm272_vm3, %v1275_v5  ;;  %v1474_v26 = vadd.f32 %v2518_v9, %v1406_v20  ;;  %v1569_v33 = vmax.f32 %v1505_v19, 0.0 }
  0xcf   : > { %v2623_v7 = vpop.f32.mrf.mxu1  ;;  %v1032_v15 = vpop.f32.mrf.mxu2 }
  0xd0   : > { %v1202_v21 = vadd.f32 %v2563_v29, %v1032_v15  ;;  %v2020_v29 = vor.u32 %v2172_v30, %v2017_v31  ;;  %v1538_v35 = vmax.f32 %v1474_v26, 0.0  ;;  %1633 = vst.msk [vmem:[%s2555_s22 + $0x110] sm:$0xff] %vm272_vm3, %v1569_v33  ;;  %v2174_v15 = vld [vmem:[%s2314_s30 + $0x1d4] sm:$0xf]  ;;  %v2173_v30 = vld [vmem:[%s2314_s30 + $0x1c4] sm:$0xf0] }
  0xd1   : > { %v954_v22 = vpop.f32.mrf.mxu0 }
  0xd2   : > { %v1124_v28 = vadd.f32 %v2578_v32, %v954_v22  ;;  %v1307_v34 = vadd.f32 %v1202_v21, %v373_v14  ;;  %2109 = vmatmul.msk.bf16.gmra.mxu3 %vm829_vm2, %v2020_v29  ;;  %1602 = vst.msk [vmem:[%s2555_s22 + $0x18] sm:$0xff] %vm272_vm3, %v1538_v35 }
  0xd3   : > { %v1438_v36 = vld [vmem:[#allocation2 + $0x118] sm:$0xff] }
  0xd4   : > { %v1276_v39 = vadd.f32 %v1124_v28, %v342_v16  ;;  %v1506_v32 = vadd.f32 %v2518_v9, %v1438_v36  ;;  %1372 = vst.msk [vmem:[#allocation2 + $0x120] sm:$0xff] %vm272_vm3, %v1307_v34  ;;  %v2025_v16 = vld [vmem:[%s2314_s30 + $0x1d8] sm:$0xf0]  ;;  %v2015_v28 = vld [vmem:[%s2314_s30 + $0x1c0] sm:$0xf] }
  0xd5   : > { %v1407_v40 = vld [vmem:[#allocation2 + $0x20] sm:$0xff]  ;;  %v2671_v3 = vpop.f32.mrf.mxu3  ;;  %v2028_v19 = vor.u32 %v2174_v15, %v2025_v16  ;;  %v376_v34 = vld [vmem:[#allocation2 + $0x138] sm:$0xff]  ;;  %v378_v16 = vld [vmem:[#allocation2 + $0x148] sm:$0xff] }
  0xd6   : > { %v1475_v44 = vadd.f32 %v2518_v9, %v1407_v40  ;;  %v1570_v48 = vmax.f32 %v1506_v32, 0.0  ;;  %1341 = vst.msk [vmem:[#allocation2 + $0x28] sm:$0xff] %vm272_vm3, %v1276_v39  ;;  %v345_v32 = vld [vmem:[#allocation2 + $0x40] sm:$0xff] }
  0xd7   : > { %v2650_v45 = vpop.f32.mrf.mxu1  ;;  %v1034_v51 = vpop.f32.mrf.mxu2 }
  0xd8   : > { %v1539_v49 = vmax.f32 %v1475_v44, 0.0  ;;  %1634 = vst.msk [vmem:[%s2555_s22 + $0x118] sm:$0xff] %vm272_vm3, %v1570_v48  ;;  %v1204_v54 = vadd.f32 %v2586_v38, %v1034_v51  ;;  %v377_v51 = vld [vmem:[#allocation2 + $0x140] sm:$0xff] }
  0xd9   : > { %v957_v56 = vpop.f32.mrf.mxu0 }
  0xda   : > { %2093 = vmatmul.msk.bf16.gmra.mxu1 %vm829_vm2, %v1892_v41  ;;  %1603 = vst.msk [vmem:[%s2555_s22 + $0x20] sm:$0xff] %vm272_vm3, %v1539_v49  ;;  %v1127_v59 = vadd.f32 %v2608_v57, %v957_v56  ;;  %v1308_v60 = vadd.f32 %v1204_v54, %v374_v50  ;;  %v2016_v41 = vor.u32 %v2173_v30, %v2015_v28  ;;  %v346_v56 = vld [vmem:[#allocation2 + $0x48] sm:$0xff] }
  0xdb   : > { %v1439_v62 = vld [vmem:[#allocation2 + $0x120] sm:$0xff] }
  0xdc   : > { %v1277_v61 = vadd.f32 %v1127_v59, %v343_v55  ;;  %996 = vmatmul.bf16.gmra.mxu0 %v1880_v52  ;;  %1373 = vst.msk [vmem:[#allocation2 + $0x128] sm:$0xff] %vm272_vm3, %v1308_v60  ;;  %1076 = vmatmul.bf16.gmra.mxu2 %v2008_v58  ;;  %v1507_v0 = vadd.f32 %v2518_v9, %v1439_v62  ;;  %v2144_v59 = vld [vmem:[%s2314_s30 + $0xe4] sm:$0xf]  ;;  %v1905_v60 = vld [vmem:[%s2314_s30 + $0xe8] sm:$0xf0] }
  0xdd   : > { %v1408_v37 = vld [vmem:[#allocation2 + $0x28] sm:$0xff]  ;;  %v2694_v36 = vpop.f32.mrf.mxu3  ;;  %v2176_v62 = vld [vmem:[%s2314_s30 + $0x1e4] sm:$0xf] }
  0xde   : > { %1342 = vst.msk [vmem:[#allocation2 + $0x30] sm:$0xff] %vm272_vm3, %v1277_v61  ;;  %v1476_v57 = vadd.f32 %v2518_v9, %v1408_v37  ;;  %v1571_v4 = vmax.f32 %v1507_v0, 0.0  ;;  %v2033_v0 = vld [vmem:[%s2314_s30 + $0x1e8] sm:$0xf0] }
  0xdf   : > { %v2667_v38 = vpop.f32.mrf.mxu1  ;;  %v1037_v2 = vpop.f32.mrf.mxu2 }
  0xe0   : > { %v1207_v5 = vadd.f32 %v2614_v63, %v1037_v2  ;;  %v1540_v13 = vmax.f32 %v1476_v57, 0.0  ;;  %1635 = vst.msk [vmem:[%s2555_s22 + $0x120] sm:$0xff] %vm272_vm3, %v1571_v4  ;;  %v2036_v57 = vor.u32 %v2176_v62, %v2033_v0  ;;  %v380_v0 = vld [vmem:[#allocation2 + $0x158] sm:$0xff] }
  0xe1   : > { %v959_v8 = vpop.f32.mrf.mxu0 }
  0xe2   : > { %v1129_v14 = vadd.f32 %v2623_v7, %v959_v8  ;;  %v1309_v18 = vadd.f32 %v1207_v5, %v375_v1  ;;  %1604 = vst.msk [vmem:[%s2555_s22 + $0x28] sm:$0xff] %vm272_vm3, %v1540_v13  ;;  %v1887_v7 = vld [vmem:[%s2314_s30 + $0xc0] sm:$0xf]  ;;  %2110 = vmatmul.msk.bf16.gmra.mxu3 %vm829_vm2, %v2028_v19  ;;  %v1908_v5 = vor.u32 %v2144_v59, %v1905_v60  ;;  %v2143_v8 = vld [vmem:[%s2314_s30 + $0xd4] sm:$0xf0] }
  0xe3   : > { %v1440_v63 = vld [vmem:[#allocation2 + $0x128] sm:$0xff]  ;;  %v1888_v35 = vor.u32 %v2141_v24, %v1887_v7  ;;  %v2175_v13 = vld [vmem:[%s2314_s30 + $0x1d4] sm:$0xf0]  ;;  %v2031_v59 = vld [vmem:[%s2314_s30 + $0x1e0] sm:$0xf] }
  0xe4   : > { %v1278_v20 = vadd.f32 %v1129_v14, %v344_v6  ;;  %v1508_v21 = vadd.f32 %v2518_v9, %v1440_v63  ;;  %1374 = vst.msk [vmem:[#allocation2 + $0x130] sm:$0xff] %vm272_vm3, %v1309_v18  ;;  %v1895_v6 = vld [vmem:[%s2314_s30 + $0xd0] sm:$0xf]  ;;  %v2177_v60 = vld [vmem:[%s2314_s30 + $0x1e4] sm:$0xf0] }
  0xe5   : > { %v1409_v22 = vld [vmem:[#allocation2 + $0x30] sm:$0xff]  ;;  %v2709_v54 = vpop.f32.mrf.mxu3  ;;  %v1896_v19 = vor.u32 %v2143_v8, %v1895_v6 }
  0xe6   : > { %v1477_v25 = vadd.f32 %v2518_v9, %v1409_v22  ;;  %1343 = vst.msk [vmem:[#allocation2 + $0x38] sm:$0xff] %vm272_vm3, %v1278_v20  ;;  %v1572_v31 = vmax.f32 %v1508_v21, 0.0  ;;  %v347_v21 = vld [vmem:[#allocation2 + $0x50] sm:$0xff] }
  0xe7   : > { %v2690_v26 = vpop.f32.mrf.mxu1  ;;  %v1039_v29 = vpop.f32.mrf.mxu2 }
  0xe8   : > { %v1541_v33 = vmax.f32 %v1477_v25, 0.0  ;;  %1636 = vst.msk [vmem:[%s2555_s22 + $0x128] sm:$0xff] %vm272_vm3, %v1572_v31  ;;  %v1209_v39 = vadd.f32 %v2627_v17, %v1039_v29  ;;  %v379_v29 = vld [vmem:[#allocation2 + $0x150] sm:$0xff] }
  0xe9   : > { %v962_v40 = vpop.f32.mrf.mxu0 }
  0xea   : > { %2094 = vmatmul.msk.bf16.gmra.mxu1 %vm829_vm2, %v1900_v23  ;;  %1605 = vst.msk [vmem:[%s2555_s22 + $0x30] sm:$0xff] %vm272_vm3, %v1541_v33  ;;  %v1132_v42 = vadd.f32 %v2650_v45, %v962_v40  ;;  %v1310_v43 = vadd.f32 %v1209_v39, %v376_v34  ;;  %v2024_v23 = vor.u32 %v2175_v13, %v2023_v12  ;;  %v348_v40 = vld [vmem:[#allocation2 + $0x58] sm:$0xff] }
  0xeb   : > { %v1441_v44 = vld [vmem:[#allocation2 + $0x130] sm:$0xff] }
  0xec   : > { %v1279_v46 = vadd.f32 %v1132_v42, %v345_v32  ;;  %1001 = vmatmul.bf16.gmra.mxu0 %v1888_v35  ;;  %v1509_v47 = vadd.f32 %v2518_v9, %v1441_v44  ;;  %1375 = vst.msk [vmem:[#allocation2 + $0x138] sm:$0xff] %vm272_vm3, %v1310_v43  ;;  %1081 = vmatmul.bf16.gmra.mxu2 %v2016_v41  ;;  %v2146_v42 = vld [vmem:[%s2314_s30 + $0xf4] sm:$0xf]  ;;  %v1913_v43 = vld [vmem:[%s2314_s30 + $0xf8] sm:$0xf0] }
  0xed   : > { %v1410_v48 = vld [vmem:[#allocation2 + $0x38] sm:$0xff]  ;;  %v2732_v63 = vpop.f32.mrf.mxu3 }
  0xee   : > { %v1478_v17 = vadd.f32 %v2518_v9, %v1410_v48  ;;  %1344 = vst.msk [vmem:[#allocation2 + $0x40] sm:$0xff] %vm272_vm3, %v1279_v46  ;;  %v1573_v49 = vmax.f32 %v1509_v47, 0.0  ;;  %v2178_v46 = vld [vmem:[%s2314_s30 + $0x1f4] sm:$0xf]  ;;  %v2041_v47 = vld [vmem:[%s2314_s30 + $0x1f8] sm:$0xf0] }
  0xef   : > { %v2707_v45 = vpop.f32.mrf.mxu1  ;;  %v1042_v52 = vpop.f32.mrf.mxu2 }
  0xf0   : > { %v1542_v50 = vmax.f32 %v1478_v17, 0.0  ;;  %1637 = vst.msk [vmem:[%s2555_s22 + $0x130] sm:$0xff] %vm272_vm3, %v1573_v49  ;;  %v1212_v55 = vadd.f32 %v2656_v53, %v1042_v52  ;;  %v2044_v17 = vor.u32 %v2178_v46, %v2041_v47  ;;  %v1916_v52 = vor.u32 %v2146_v42, %v1913_v43  ;;  %v382_v43 = vld [vmem:[#allocation2 + $0x168] sm:$0xff] }
  0xf1   : > { %v964_v58 = vpop.f32.mrf.mxu0 }
  0xf2   : > { %1606 = vst.msk [vmem:[%s2555_s22 + $0x38] sm:$0xff] %vm272_vm3, %v1542_v50  ;;  %v1134_v61 = vadd.f32 %v2667_v38, %v964_v58  ;;  %v1311_v37 = vadd.f32 %v1212_v55, %v377_v51  ;;  %2111 = vmatmul.msk.bf16.gmra.mxu3 %vm829_vm2, %v2036_v57  ;;  %v1903_v55 = vld [vmem:[%s2314_s30 + $0xe0] sm:$0xf] }
  0xf3   : > { %v1442_v1 = vld [vmem:[#allocation2 + $0x138] sm:$0xff] }
  0xf4   : > { %v1280_v2 = vadd.f32 %v1134_v61, %v346_v56  ;;  %v1510_v53 = vadd.f32 %v2518_v9, %v1442_v1  ;;  %1376 = vst.msk [vmem:[#allocation2 + $0x140] sm:$0xff] %vm272_vm3, %v1311_v37  ;;  %v2145_v56 = vld [vmem:[%s2314_s30 + $0xe4] sm:$0xf0] }
  0xf5   : > { %v1411_v4 = vld [vmem:[#allocation2 + $0x40] sm:$0xff]  ;;  %v2747_v39 = vpop.f32.mrf.mxu3  ;;  %v1904_v57 = vor.u32 %v2145_v56, %v1903_v55 }
  0xf6   : > { %v1479_v38 = vadd.f32 %v2518_v9, %v1411_v4  ;;  %1345 = vst.msk [vmem:[#allocation2 + $0x48] sm:$0xff] %vm272_vm3, %v1280_v2  ;;  %v1574_v14 = vmax.f32 %v1510_v53, 0.0  ;;  %v349_v53 = vld [vmem:[#allocation2 + $0x60] sm:$0xff] }
  0xf7   : > { %v2728_v11 = vpop.f32.mrf.mxu1  ;;  %v1044_v18 = vpop.f32.mrf.mxu2 }
  0xf8   : > { %v1543_v15 = vmax.f32 %v1479_v38, 0.0  ;;  %1638 = vst.msk [vmem:[%s2555_s22 + $0x138] sm:$0xff] %vm272_vm3, %v1574_v14  ;;  %v1214_v20 = vadd.f32 %v2671_v3, %v1044_v18  ;;  %v381_v18 = vld [vmem:[#allocation2 + $0x160] sm:$0xff] }
  0xf9   : > { %v967_v22 = vpop.f32.mrf.mxu0 }
  0xfa   : > { %2095 = vmatmul.msk.bf16.gmra.mxu1 %vm829_vm2, %v1908_v5  ;;  %1607 = vst.msk [vmem:[%s2555_s22 + $0x40] sm:$0xff] %vm272_vm3, %v1543_v15  ;;  %v1137_v7 = vadd.f32 %v2690_v26, %v967_v22  ;;  %v1312_v24 = vadd.f32 %v1214_v20, %v378_v16  ;;  %v2032_v5 = vor.u32 %v2177_v60, %v2031_v59  ;;  %v350_v22 = vld [vmem:[#allocation2 + $0x68] sm:$0xff] }
  0xfb   : > { %v1443_v25 = vld [vmem:[#allocation2 + $0x140] sm:$0xff] }
  0xfc   : > { %v1281_v28 = vadd.f32 %v1137_v7, %v347_v21  ;;  %1006 = vmatmul.bf16.gmra.mxu0 %v1896_v19  ;;  %v1511_v30 = vadd.f32 %v2518_v9, %v1443_v25  ;;  %1377 = vst.msk [vmem:[#allocation2 + $0x148] sm:$0xff] %vm272_vm3, %v1312_v24  ;;  %1086 = vmatmul.bf16.gmra.mxu2 %v2024_v23  ;;  %v2148_v24 = vld [vmem:[%s2314_s30 + $0x104] sm:$0xf]  ;;  %v1921_v25 = vld [vmem:[%s2314_s30 + $0x108] sm:$0xf0] }
  0xfd   : > { %v1412_v31 = vld [vmem:[#allocation2 + $0x48] sm:$0xff]  ;;  %v2770_v1 = vpop.f32.mrf.mxu3 }
  0xfe   : > { %v1480_v3 = vadd.f32 %v2518_v9, %v1412_v31  ;;  %1346 = vst.msk [vmem:[#allocation2 + $0x50] sm:$0xff] %vm272_vm3, %v1281_v28  ;;  %v1575_v33 = vmax.f32 %v1511_v30, 0.0 }
  0xff   : > { %v2745_v26 = vpop.f32.mrf.mxu1  ;;  %v1047_v35 = vpop.f32.mrf.mxu2 }
 0x100   : > { %v1544_v34 = vmax.f32 %v1480_v3, 0.0  ;;  %1639 = vst.msk [vmem:[%s2555_s22 + $0x140] sm:$0xff] %vm272_vm3, %v1575_v33  ;;  %v1217_v32 = vadd.f32 %v2694_v36, %v1047_v35 }
 0x101   : > { %v969_v41 = vpop.f32.mrf.mxu0 }
 0x102   : > { %1608 = vst.msk [vmem:[%s2555_s22 + $0x48] sm:$0xff] %vm272_vm3, %v1544_v34  ;;  %v1139_v44 = vadd.f32 %v2707_v45, %v969_v41  ;;  %v1313_v48 = vadd.f32 %v1217_v32, %v379_v29  ;;  %2112 = vmatmul.msk.bf16.gmra.mxu3 %vm829_vm2, %v2044_v17  ;;  %v1911_v34 = vld [vmem:[%s2314_s30 + $0xf0] sm:$0xf]  ;;  %v2147_v29 = vld [vmem:[%s2314_s30 + $0xf4] sm:$0xf0] }
 0x103   : > { %v1444_v49 = vld [vmem:[#allocation2 + $0x148] sm:$0xff]  ;;  %v2039_v32 = vld [vmem:[%s2314_s30 + $0x1f0] sm:$0xf]  ;;  %v1912_v46 = vor.u32 %v2147_v29, %v1911_v34 }
 0x104   : > { %v1282_v50 = vadd.f32 %v1139_v44, %v348_v40  ;;  %v1512_v36 = vadd.f32 %v2518_v9, %v1444_v49  ;;  %1378 = vst.msk [vmem:[#allocation2 + $0x150] sm:$0xff] %vm272_vm3, %v1313_v48  ;;  %v2179_v40 = vld [vmem:[%s2314_s30 + $0x1f4] sm:$0xf0]  ;;  %v351_v17 = vld [vmem:[#allocation2 + $0x70] sm:$0xff]  ;;  %v354_v29 = vld [vmem:[#allocation2 + $0x88] sm:$0xff] }
 0x105   : > { %v1413_v51 = vld [vmem:[#allocation2 + $0x50] sm:$0xff]  ;;  %v2785_v20 = vpop.f32.mrf.mxu3 }
 0x106   : > { %v1481_v45 = vadd.f32 %v2518_v9, %v1413_v51  ;;  %1347 = vst.msk [vmem:[#allocation2 + $0x58] sm:$0xff] %vm272_vm3, %v1282_v50  ;;  %v1576_v61 = vmax.f32 %v1512_v36, 0.0  ;;  %v2040_v50 = vor.u32 %v2179_v40, %v2039_v32 }
 0x107   : > { %v2766_v58 = vpop.f32.mrf.mxu1  ;;  %v1049_v37 = vpop.f32.mrf.mxu2 }
 0x108   : > { %v1545_v62 = vmax.f32 %v1481_v45, 0.0  ;;  %1640 = vst.msk [vmem:[%s2555_s22 + $0x148] sm:$0xff] %vm272_vm3, %v1576_v61  ;;  %v1219_v2 = vadd.f32 %v2709_v54, %v1049_v37 }
 0x109   : > { %v972_v4 = vpop.f32.mrf.mxu0 }
 0x10a   : > { %2096 = vmatmul.msk.bf16.gmra.mxu1 %vm829_vm2, %v1916_v52  ;;  %1609 = vst.msk [vmem:[%s2555_s22 + $0x50] sm:$0xff] %vm272_vm3, %v1545_v62  ;;  %v1142_v6 = vadd.f32 %v2728_v11, %v972_v4  ;;  %v1314_v8 = vadd.f32 %v1219_v2, %v380_v0 }
 0x10b   : > { %v1445_v38 = vld [vmem:[#allocation2 + $0x150] sm:$0xff] }
 0x10c   : > { %v1283_v12 = vadd.f32 %v1142_v6, %v349_v53  ;;  %1011 = vmatmul.bf16.gmra.mxu0 %v1904_v57  ;;  %v1513_v13 = vadd.f32 %v2518_v9, %v1445_v38  ;;  %1379 = vst.msk [vmem:[#allocation2 + $0x158] sm:$0xff] %vm272_vm3, %v1314_v8  ;;  %1091 = vmatmul.bf16.gmra.mxu2 %v2032_v5  ;;  %v352_v57 = vld [vmem:[#allocation2 + $0x78] sm:$0xff] }
 0x10d   : > { %v1414_v14 = vld [vmem:[#allocation2 + $0x58] sm:$0xff]  ;;  %v2803_v47 = vpop.f32.mrf.mxu3 }
 0x10e   : > { %v1482_v54 = vadd.f32 %v2518_v9, %v1414_v14  ;;  %1348 = vst.msk [vmem:[#allocation2 + $0x60] sm:$0xff] %vm272_vm3, %v1283_v12  ;;  %v1577_v11 = vmax.f32 %v1513_v13, 0.0 }
 0x10f   : > { %v2783_v15 = vpop.f32.mrf.mxu1  ;;  %v1052_v19 = vpop.f32.mrf.mxu2 }
 0x110   : > { %v1546_v16 = vmax.f32 %v1482_v54, 0.0  ;;  %1641 = vst.msk [vmem:[%s2555_s22 + $0x150] sm:$0xff] %vm272_vm3, %v1577_v11  ;;  %v1222_v21 = vadd.f32 %v2732_v63, %v1052_v19  ;;  %v1924_v63 = vor.u32 %v2148_v24, %v1921_v25  ;;  %v384_v54 = vld [vmem:[#allocation2 + $0x178] sm:$0xff] }
 0x111   : > { %v974_v23 = vpop.f32.mrf.mxu0 }
 0x112   : > { %1610 = vst.msk [vmem:[%s2555_s22 + $0x58] sm:$0xff] %vm272_vm3, %v1546_v16  ;;  %v1144_v7 = vadd.f32 %v2745_v26, %v974_v23  ;;  %v1315_v28 = vadd.f32 %v1222_v21, %v381_v18  ;;  %v353_v18 = vld [vmem:[#allocation2 + $0x80] sm:$0xff] }
 0x113   : > { %v1446_v30 = vld [vmem:[#allocation2 + $0x158] sm:$0xff] }
 0x114   : > { %v1284_v31 = vadd.f32 %v1144_v7, %v350_v22  ;;  %v1514_v3 = vadd.f32 %v2518_v9, %v1446_v30  ;;  %1380 = vst.msk [vmem:[#allocation2 + $0x160] sm:$0xff] %vm272_vm3, %v1315_v28 }
 0x115   : > { %v1415_v33 = vld [vmem:[#allocation2 + $0x60] sm:$0xff]  ;;  %v1233_v0 = vpop.f32.mrf.mxu3 }
 0x116   : > { %v1483_v35 = vadd.f32 %v2518_v9, %v1415_v33  ;;  %1349 = vst.msk [vmem:[#allocation2 + $0x68] sm:$0xff] %vm272_vm3, %v1284_v31  ;;  %v1578_v41 = vmax.f32 %v1514_v3, 0.0  ;;  %v385_v3 = vld [vmem:[#allocation2 + $0x180] sm:$0xff] }
 0x117   : > { %v1151_v26 = vpop.f32.mrf.mxu1  ;;  %v1054_v44 = vpop.f32.mrf.mxu2 }
 0x118   : > { %v1547_v42 = vmax.f32 %v1483_v35, 0.0  ;;  %1642 = vst.msk [vmem:[%s2555_s22 + $0x158] sm:$0xff] %vm272_vm3, %v1578_v41  ;;  %v1224_v48 = vadd.f32 %v2747_v39, %v1054_v44 }
 0x119   : > { %v977_v49 = vpop.f32.mrf.mxu0 }
 0x11a   : > { %2097 = vmatmul.msk.bf16.gmra.mxu1 %vm829_vm2, %v1924_v63  ;;  %1611 = vst.msk [vmem:[%s2555_s22 + $0x60] sm:$0xff] %vm272_vm3, %v1547_v42  ;;  %v1147_v36 = vadd.f32 %v2766_v58, %v977_v49  ;;  %v1316_v51 = vadd.f32 %v1224_v48, %v382_v43  ;;  %v383_v58 = vld [vmem:[#allocation2 + $0x170] sm:$0xff] }
 0x11b   : > { %v1447_v52 = vld [vmem:[#allocation2 + $0x160] sm:$0xff] }
 0x11c   : > { %v1285_v55 = vadd.f32 %v1147_v36, %v351_v17  ;;  %1016 = vmatmul.bf16.gmra.mxu0 %v1912_v46  ;;  %v1515_v56 = vadd.f32 %v2518_v9, %v1447_v52  ;;  %1381 = vst.msk [vmem:[#allocation2 + $0x168] sm:$0xff] %vm272_vm3, %v1316_v51  ;;  %1096 = vmatmul.bf16.gmra.mxu2 %v2040_v50  ;;  %v386_v17 = vld [vmem:[#allocation2 + $0x188] sm:$0xff]  ;;  %v355_v36 = vld [vmem:[#allocation2 + $0x90] sm:$0xff] }
 0x11d   : > { %v1416_v45 = vld [vmem:[#allocation2 + $0x68] sm:$0xff]  ;;  %v1236_v16 = vpop.f32.mrf.mxu3 }
 0x11e   : > { %v1484_v39 = vadd.f32 %v2518_v9, %v1416_v45  ;;  %1350 = vst.msk [vmem:[#allocation2 + $0x70] sm:$0xff] %vm272_vm3, %v1285_v55  ;;  %v1579_v60 = vmax.f32 %v1515_v56, 0.0 }
 0x11f   : > { %v1153_v59 = vpop.f32.mrf.mxu1  ;;  %v1057_v62 = vpop.f32.mrf.mxu2 }
 0x120   : > { %v1548_v61 = vmax.f32 %v1484_v39, 0.0  ;;  %1643 = vst.msk [vmem:[%s2555_s22 + $0x160] sm:$0xff] %vm272_vm3, %v1579_v60  ;;  %v1227_v37 = vadd.f32 %v2770_v1, %v1057_v62 }
 0x121   : > { %v979_v2 = vpop.f32.mrf.mxu0 }
 0x122   : > { %1612 = vst.msk [vmem:[%s2555_s22 + $0x68] sm:$0xff] %vm272_vm3, %v1548_v61  ;;  %v1149_v53 = vadd.f32 %v2783_v15, %v979_v2  ;;  %v1317_v4 = vadd.f32 %v1227_v37, %v383_v58  ;;  %v387_v37 = vld [vmem:[#allocation2 + $0x190] sm:$0xff] }
 0x123   : > { %v1448_v5 = vld [vmem:[#allocation2 + $0x168] sm:$0xff] }
 0x124   : > { %v1286_v6 = vadd.f32 %v1149_v53, %v352_v57  ;;  %v1516_v8 = vadd.f32 %v2518_v9, %v1448_v5  ;;  %1382 = vst.msk [vmem:[#allocation2 + $0x170] sm:$0xff] %vm272_vm3, %v1317_v4  ;;  %v356_v53 = vld [vmem:[#allocation2 + $0x98] sm:$0xff] }
 0x125   : > { %v1417_v38 = vld [vmem:[#allocation2 + $0x70] sm:$0xff]  ;;  %v1238_v63 = vpop.f32.mrf.mxu3 }
 0x126   : > { %v1485_v12 = vadd.f32 %v2518_v9, %v1417_v38  ;;  %1351 = vst.msk [vmem:[#allocation2 + $0x78] sm:$0xff] %vm272_vm3, %v1286_v6  ;;  %v1580_v13 = vmax.f32 %v1516_v8, 0.0 }
 0x127   : > { %v1156_v1 = vpop.f32.mrf.mxu1  ;;  %v1059_v11 = vpop.f32.mrf.mxu2 }
 0x128   : > { %v1549_v14 = vmax.f32 %v1485_v12, 0.0  ;;  %1644 = vst.msk [vmem:[%s2555_s22 + $0x168] sm:$0xff] %vm272_vm3, %v1580_v13  ;;  %v1229_v15 = vadd.f32 %v2785_v20, %v1059_v11 }
 0x129   : > { %v982_v19 = vpop.f32.mrf.mxu0 }
 0x12a   : > { %1613 = vst.msk [vmem:[%s2555_s22 + $0x70] sm:$0xff] %vm272_vm3, %v1549_v14  ;;  %v1152_v21 = vadd.f32 %v1151_v26, %v982_v19  ;;  %v1318_v22 = vadd.f32 %v1229_v15, %v384_v54  ;;  %v388_v15 = vld [vmem:[#allocation2 + $0x198] sm:$0xff] }
 0x12b   : > { %v1449_v23 = vld [vmem:[#allocation2 + $0x170] sm:$0xff] }
 0x12c   : > { %v1287_v7 = vadd.f32 %v1152_v21, %v353_v18  ;;  %v1517_v24 = vadd.f32 %v2518_v9, %v1449_v23  ;;  %1383 = vst.msk [vmem:[#allocation2 + $0x178] sm:$0xff] %vm272_vm3, %v1318_v22  ;;  %v357_v21 = vld [vmem:[#allocation2 + $0xa0] sm:$0xff] }
 0x12d   : > { %v1418_v25 = vld [vmem:[#allocation2 + $0x78] sm:$0xff]  ;;  %v1241_v55 = vpop.f32.mrf.mxu3 }
 0x12e   : > { %v1486_v28 = vadd.f32 %v2518_v9, %v1418_v25  ;;  %1352 = vst.msk [vmem:[#allocation2 + $0x80] sm:$0xff] %vm272_vm3, %v1287_v7  ;;  %v1581_v30 = vmax.f32 %v1517_v24, 0.0 }
 0x12f   : > { %v1158_v20 = vpop.f32.mrf.mxu1  ;;  %v1062_v33 = vpop.f32.mrf.mxu2 }
 0x130   : > { %v1550_v31 = vmax.f32 %v1486_v28, 0.0  ;;  %1645 = vst.msk [vmem:[%s2555_s22 + $0x170] sm:$0xff] %vm272_vm3, %v1581_v30  ;;  %v1232_v34 = vadd.f32 %v2803_v47, %v1062_v33 }
 0x131   : > { %v984_v35 = vpop.f32.mrf.mxu0 }
 0x132   : > { %1614 = vst.msk [vmem:[%s2555_s22 + $0x78] sm:$0xff] %vm272_vm3, %v1550_v31  ;;  %v1154_v26 = vadd.f32 %v1153_v59, %v984_v35  ;;  %v1319_v32 = vadd.f32 %v1232_v34, %v385_v3  ;;  %v389_v34 = vld [vmem:[#allocation2 + $0x1a0] sm:$0xff] }
 0x133   : > { %v1450_v40 = vld [vmem:[#allocation2 + $0x178] sm:$0xff] }
 0x134   : > { %v1288_v41 = vadd.f32 %v1154_v26, %v354_v29  ;;  %v1518_v42 = vadd.f32 %v2518_v9, %v1450_v40  ;;  %1384 = vst.msk [vmem:[#allocation2 + $0x180] sm:$0xff] %vm272_vm3, %v1319_v32  ;;  %v358_v26 = vld [vmem:[#allocation2 + $0xa8] sm:$0xff] }
 0x135   : > { %v1419_v43 = vld [vmem:[#allocation2 + $0x80] sm:$0xff]  ;;  %v1243_v12 = vpop.f32.mrf.mxu3 }
 0x136   : > { %v1487_v44 = vadd.f32 %v2518_v9, %v1419_v43  ;;  %1353 = vst.msk [vmem:[#allocation2 + $0x88] sm:$0xff] %vm272_vm3, %v1288_v41  ;;  %v1582_v47 = vmax.f32 %v1518_v42, 0.0  ;;  %v2875_v43 = vld [vmem:[%s2996_s2] ss:$0 sm:$0xff] }
 0x137   : > { %v1161_v46 = vpop.f32.mrf.mxu1  ;;  %v1064_v49 = vpop.f32.mrf.mxu2 }
 0x138   : > { %v1551_v48 = vmax.f32 %v1487_v44, 0.0  ;;  %1646 = vst.msk [vmem:[%s2555_s22 + $0x178] sm:$0xff] %vm272_vm3, %v1582_v47  ;;  %v1234_v50 = vadd.f32 %v1233_v0, %v1064_v49 }
 0x139   : > { %v987_v51 = vpop.f32.mrf.mxu0 }
 0x13a   : > { %1615 = vst.msk [vmem:[%s2555_s22 + $0x80] sm:$0xff] %vm272_vm3, %v1551_v48  ;;  %v1157_v52 = vadd.f32 %v1156_v1, %v987_v51  ;;  %v1320_v56 = vadd.f32 %v1234_v50, %v386_v17  ;;  %v390_v50 = vld [vmem:[#allocation2 + $0x1a8] sm:$0xff] }
 0x13b   : > { %v1451_v45 = vld [vmem:[#allocation2 + $0x180] sm:$0xff] }
 0x13c   : > { %v1289_v39 = vadd.f32 %v1157_v52, %v355_v36  ;;  %v1519_v59 = vadd.f32 %v2518_v9, %v1451_v45  ;;  %1385 = vst.msk [vmem:[#allocation2 + $0x188] sm:$0xff] %vm272_vm3, %v1320_v56 }
 0x13d   : > { %v1420_v60 = vld [vmem:[#allocation2 + $0x88] sm:$0xff]  ;;  %v1246_v3 = vpop.f32.mrf.mxu3 }
 0x13e   : > { %v1488_v61 = vadd.f32 %v2518_v9, %v1420_v60  ;;  %1354 = vst.msk [vmem:[#allocation2 + $0x90] sm:$0xff] %vm272_vm3, %v1289_v39  ;;  %v1583_v62 = vmax.f32 %v1519_v59, 0.0 }
 0x13f   : > { %v1163_v58 = vpop.f32.mrf.mxu1  ;;  %v1067_v57 = vpop.f32.mrf.mxu2 }
 0x140   : > { %v1552_v0 = vmax.f32 %v1488_v61, 0.0  ;;  %1647 = vst.msk [vmem:[%s2555_s22 + $0x180] sm:$0xff] %vm272_vm3, %v1583_v62  ;;  %v1237_v2 = vadd.f32 %v1236_v16, %v1067_v57 }
 0x141   : > { %v989_v4 = vpop.f32.mrf.mxu0 }
 0x142   : > { %1616 = vst.msk [vmem:[%s2555_s22 + $0x88] sm:$0xff] %vm272_vm3, %v1552_v0  ;;  %v1159_v5 = vadd.f32 %v1158_v20, %v989_v4  ;;  %v1321_v6 = vadd.f32 %v1237_v2, %v387_v37  ;;  %v391_v2 = vld [vmem:[#allocation2 + $0x1b0] sm:$0xff] }
 0x143   : > { %v1452_v8 = vld [vmem:[#allocation2 + $0x188] sm:$0xff] }
 0x144   : > { %v1290_v38 = vadd.f32 %v1159_v5, %v356_v53  ;;  %v1520_v1 = vadd.f32 %v2518_v9, %v1452_v8  ;;  %1386 = vst.msk [vmem:[#allocation2 + $0x190] sm:$0xff] %vm272_vm3, %v1321_v6  ;;  %v360_v5 = vld [vmem:[#allocation2 + $0xb8] sm:$0xff] }
 0x145   : > { %v1421_v13 = vld [vmem:[#allocation2 + $0x90] sm:$0xff]  ;;  %v1248_v51 = vpop.f32.mrf.mxu3 }
 0x146   : > { %v1489_v14 = vadd.f32 %v2518_v9, %v1421_v13  ;;  %1355 = vst.msk [vmem:[#allocation2 + $0x98] sm:$0xff] %vm272_vm3, %v1290_v38  ;;  %v1584_v11 = vmax.f32 %v1520_v1, 0.0 }
 0x147   : > { %v1166_v54 = vpop.f32.mrf.mxu1  ;;  %v1069_v18 = vpop.f32.mrf.mxu2 }
 0x148   : > { %v1553_v16 = vmax.f32 %v1489_v14, 0.0  ;;  %1648 = vst.msk [vmem:[%s2555_s22 + $0x188] sm:$0xff] %vm272_vm3, %v1584_v11  ;;  %v1239_v19 = vadd.f32 %v1238_v63, %v1069_v18 }
 0x149   : > { %v992_v22 = vpop.f32.mrf.mxu0 }
 0x14a   : > { %1617 = vst.msk [vmem:[%s2555_s22 + $0x90] sm:$0xff] %vm272_vm3, %v1553_v16  ;;  %v1162_v23 = vadd.f32 %v1161_v46, %v992_v22  ;;  %v1322_v7 = vadd.f32 %v1239_v19, %v388_v15  ;;  %v392_v19 = vld [vmem:[#allocation2 + $0x1b8] sm:$0xff] }
 0x14b   : > { %v1453_v24 = vld [vmem:[#allocation2 + $0x190] sm:$0xff] }
 0x14c   : > { %v1291_v25 = vadd.f32 %v1162_v23, %v357_v21  ;;  %v1521_v28 = vadd.f32 %v2518_v9, %v1453_v24  ;;  %1387 = vst.msk [vmem:[#allocation2 + $0x198] sm:$0xff] %vm272_vm3, %v1322_v7  ;;  %v361_v23 = vld [vmem:[#allocation2 + $0xc0] sm:$0xff] }
 0x14d   : > { %v1422_v20 = vld [vmem:[#allocation2 + $0x98] sm:$0xff] }
 0x14e   : > { %v1490_v30 = vadd.f32 %v2518_v9, %v1422_v20  ;;  %1356 = vst.msk [vmem:[#allocation2 + $0xa0] sm:$0xff] %vm272_vm3, %v1291_v25  ;;  %v1585_v33 = vmax.f32 %v1521_v28, 0.0 }
 0x14f   : > { %v1168_v31 = vpop.f32.mrf.mxu1  ;;  %v1072_v29 = vpop.f32.mrf.mxu2 }
 0x150   : > { %v1554_v63 = vmax.f32 %v1490_v30, 0.0  ;;  %1649 = vst.msk [vmem:[%s2555_s22 + $0x190] sm:$0xff] %vm272_vm3, %v1585_v33  ;;  %v1242_v35 = vadd.f32 %v1241_v55, %v1072_v29  ;;  %v359_v55 = vld [vmem:[#allocation2 + $0xb0] sm:$0xff] }
 0x151   : > { %v994_v32 = vpop.f32.mrf.mxu0 }
 0x152   : > { %1618 = vst.msk [vmem:[%s2555_s22 + $0x98] sm:$0xff] %vm272_vm3, %v1554_v63  ;;  %v1164_v40 = vadd.f32 %v1163_v58, %v994_v32  ;;  %v1323_v41 = vadd.f32 %v1242_v35, %v389_v34  ;;  %v393_v35 = vld [vmem:[#allocation2 + $0x1c0] sm:$0xff] }
 0x153   : > { %v1454_v42 = vld [vmem:[#allocation2 + $0x198] sm:$0xff] }
 0x154   : > { %v1292_v9 = vadd.f32 %v1164_v40, %v358_v26  ;;  %v1522_v44 = vadd.f32 %v2875_v43, %v1454_v42  ;;  %1388 = vst.msk [vmem:[#allocation2 + $0x1a0] sm:$0xff] %vm272_vm3, %v1323_v41  ;;  %v362_v40 = vld [vmem:[#allocation2 + $0xc8] sm:$0xff] }
 0x155   : > { %v1423_v46 = vld [vmem:[#allocation2 + $0xa0] sm:$0xff]  ;;  %v1251_v38 = vpop.f32.mrf.mxu3 }
 0x156   : > { %v1491_v47 = vadd.f32 %v2875_v43, %v1423_v46  ;;  %1357 = vst.msk [vmem:[#allocation2 + $0xa8] sm:$0xff] %vm272_vm3, %v1292_v9  ;;  %v1586_v17 = vmax.f32 %v1522_v44, 0.0 }
 0x157   : > { %v1171_v48 = vpop.f32.mrf.mxu1  ;;  %v1074_v36 = vpop.f32.mrf.mxu2 }
 0x158   : > { %v1555_v49 = vmax.f32 %v1491_v47, 0.0  ;;  %1650 = vst.msk [vmem:[%s2555_s22 + $0x198] sm:$0xff] %vm272_vm3, %v1586_v17  ;;  %v1244_v52 = vadd.f32 %v1243_v12, %v1074_v36 }
 0x159   : > { %v997_v56 = vpop.f32.mrf.mxu0 }
 0x15a   : > { %1619 = vst.msk [vmem:[%s2555_s22 + $0xa0] sm:$0xff] %vm272_vm3, %v1555_v49  ;;  %v1167_v45 = vadd.f32 %v1166_v54, %v997_v56  ;;  %v1324_v39 = vadd.f32 %v1244_v52, %v390_v50  ;;  %v394_v52 = vld [vmem:[#allocation2 + $0x1c8] sm:$0xff] }
 0x15b   : > { %v1455_v59 = vld [vmem:[#allocation2 + $0x1a0] sm:$0xff] }
 0x15c   : > { %v1293_v60 = vadd.f32 %v1167_v45, %v359_v55  ;;  %v1523_v61 = vadd.f32 %v2875_v43, %v1455_v59  ;;  %1389 = vst.msk [vmem:[#allocation2 + $0x1a8] sm:$0xff] %vm272_vm3, %v1324_v39  ;;  %v363_v45 = vld [vmem:[#allocation2 + $0xd0] sm:$0xff] }
 0x15d   : > { %v1424_v58 = vld [vmem:[#allocation2 + $0xa8] sm:$0xff]  ;;  %v1253_v30 = vpop.f32.mrf.mxu3 }
 0x15e   : > { %v1492_v62 = vadd.f32 %v2875_v43, %v1424_v58  ;;  %1358 = vst.msk [vmem:[#allocation2 + $0xb0] sm:$0xff] %vm272_vm3, %v1293_v60  ;;  %v1587_v37 = vmax.f32 %v1523_v61, 0.0 }
 0x15f   : > { %v1173_v0 = vpop.f32.mrf.mxu1  ;;  %v1077_v53 = vpop.f32.mrf.mxu2 }
 0x160   : > { %v1556_v57 = vmax.f32 %v1492_v62, 0.0  ;;  %1651 = vst.msk [vmem:[%s2555_s22 + $0x1a0] sm:$0xff] %vm272_vm3, %v1587_v37  ;;  %v1247_v4 = vadd.f32 %v1246_v3, %v1077_v53 }
 0x161   : > { %v999_v6 = vpop.f32.mrf.mxu0 }
 0x162   : > { %1620 = vst.msk [vmem:[%s2555_s22 + $0xa8] sm:$0xff] %vm272_vm3, %v1556_v57  ;;  %v1169_v8 = vadd.f32 %v1168_v31, %v999_v6  ;;  %v1325_v12 = vadd.f32 %v1247_v4, %v391_v2  ;;  %v395_v4 = vld [vmem:[#allocation2 + $0x1d0] sm:$0xff] }
 0x163   : > { %v1456_v1 = vld [vmem:[#allocation2 + $0x1a8] sm:$0xff] }
 0x164   : > { %v1294_v13 = vadd.f32 %v1169_v8, %v360_v5  ;;  %v1524_v14 = vadd.f32 %v2875_v43, %v1456_v1  ;;  %1390 = vst.msk [vmem:[#allocation2 + $0x1b0] sm:$0xff] %vm272_vm3, %v1325_v12 }
 0x165   : > { %v1425_v54 = vld [vmem:[#allocation2 + $0xb0] sm:$0xff]  ;;  %v1256_v50 = vpop.f32.mrf.mxu3 }
 0x166   : > { %v1493_v11 = vadd.f32 %v2875_v43, %v1425_v54  ;;  %1359 = vst.msk [vmem:[#allocation2 + $0xb8] sm:$0xff] %vm272_vm3, %v1294_v13  ;;  %v1588_v15 = vmax.f32 %v1524_v14, 0.0 }
 0x167   : > { %v1176_v16 = vpop.f32.mrf.mxu1  ;;  %v1079_v21 = vpop.f32.mrf.mxu2 }
 0x168   : > { %v1557_v18 = vmax.f32 %v1493_v11, 0.0  ;;  %1652 = vst.msk [vmem:[%s2555_s22 + $0x1a8] sm:$0xff] %vm272_vm3, %v1588_v15  ;;  %v1249_v22 = vadd.f32 %v1248_v51, %v1079_v21 }
 0x169   : > { %v1002_v7 = vpop.f32.mrf.mxu0 }
 0x16a   : > { %1621 = vst.msk [vmem:[%s2555_s22 + $0xb0] sm:$0xff] %vm272_vm3, %v1557_v18  ;;  %v1172_v24 = vadd.f32 %v1171_v48, %v1002_v7  ;;  %v1326_v25 = vadd.f32 %v1249_v22, %v392_v19  ;;  %v396_v22 = vld [vmem:[#allocation2 + $0x1d8] sm:$0xff] }
 0x16b   : > { %v1457_v28 = vld [vmem:[#allocation2 + $0x1b0] sm:$0xff] }
 0x16c   : > { %v1295_v20 = vadd.f32 %v1172_v24, %v361_v23  ;;  %v1525_v31 = vadd.f32 %v2875_v43, %v1457_v28  ;;  %1391 = vst.msk [vmem:[#allocation2 + $0x1b8] sm:$0xff] %vm272_vm3, %v1326_v25  ;;  %v365_v24 = vld [vmem:[#allocation2 + $0xe0] sm:$0xff] }
 0x16d   : > { %v1426_v3 = vld [vmem:[#allocation2 + $0xb8] sm:$0xff]  ;;  %v1258_v6 = vpop.f32.mrf.mxu3 }
 0x16e   : > { %v1494_v33 = vadd.f32 %v2875_v43, %v1426_v3  ;;  %1360 = vst.msk [vmem:[#allocation2 + $0xc0] sm:$0xff] %vm272_vm3, %v1295_v20  ;;  %v1589_v34 = vmax.f32 %v1525_v31, 0.0 }
 0x16f   : > { %v1178_v63 = vpop.f32.mrf.mxu1  ;;  %v1082_v26 = vpop.f32.mrf.mxu2 }
 0x170   : > { %v1558_v29 = vmax.f32 %v1494_v33, 0.0  ;;  %1653 = vst.msk [vmem:[%s2555_s22 + $0x1b0] sm:$0xff] %vm272_vm3, %v1589_v34  ;;  %v1252_v32 = vadd.f32 %v1251_v38, %v1082_v26  ;;  %v364_v38 = vld [vmem:[#allocation2 + $0xd8] sm:$0xff] }
 0x171   : > { %v1004_v41 = vpop.f32.mrf.mxu0 }
 0x172   : > { %1622 = vst.msk [vmem:[%s2555_s22 + $0xb8] sm:$0xff] %vm272_vm3, %v1558_v29  ;;  %v1174_v42 = vadd.f32 %v1173_v0, %v1004_v41  ;;  %v1327_v9 = vadd.f32 %v1252_v32, %v393_v35  ;;  %v397_v32 = vld [vmem:[#allocation2 + $0x1e0] sm:$0xff] }
 0x173   : > { %v1458_v44 = vld [vmem:[#allocation2 + $0x1b8] sm:$0xff] }
 0x174   : > { %v1296_v46 = vadd.f32 %v1174_v42, %v362_v40  ;;  %v1526_v47 = vadd.f32 %v2875_v43, %v1458_v44  ;;  %1392 = vst.msk [vmem:[#allocation2 + $0x1c0] sm:$0xff] %vm272_vm3, %v1327_v9  ;;  %v366_v42 = vld [vmem:[#allocation2 + $0xe8] sm:$0xff] }
 0x175   : > { %v1427_v48 = vld [vmem:[#allocation2 + $0xc0] sm:$0xff]  ;;  %v1261_v28 = vpop.f32.mrf.mxu3 }
 0x176   : > { %v1495_v17 = vadd.f32 %v2875_v43, %v1427_v48  ;;  %1361 = vst.msk [vmem:[#allocation2 + $0xc8] sm:$0xff] %vm272_vm3, %v1296_v46  ;;  %v1590_v36 = vmax.f32 %v1526_v47, 0.0 }
 0x177   : > { %v1181_v49 = vpop.f32.mrf.mxu1  ;;  %v1084_v55 = vpop.f32.mrf.mxu2 }
 0x178   : > { %v1559_v51 = vmax.f32 %v1495_v17, 0.0  ;;  %1654 = vst.msk [vmem:[%s2555_s22 + $0x1b8] sm:$0xff] %vm272_vm3, %v1590_v36  ;;  %v1254_v56 = vadd.f32 %v1253_v30, %v1084_v55 }
 0x179   : > { %v1007_v39 = vpop.f32.mrf.mxu0 }
 0x17a   : > { %1623 = vst.msk [vmem:[%s2555_s22 + $0xc0] sm:$0xff] %vm272_vm3, %v1559_v51  ;;  %v1177_v59 = vadd.f32 %v1176_v16, %v1007_v39  ;;  %v1328_v60 = vadd.f32 %v1254_v56, %v394_v52  ;;  %v369_v51 = vld [vmem:[#allocation2 + $0x100] sm:$0xff]  ;;  %v398_v39 = vld [vmem:[#allocation2 + $0x1e8] sm:$0xff] }
 0x17b   : > { %v1459_v61 = vld [vmem:[#allocation2 + $0x1c0] sm:$0xff] }
 0x17c   : > { %v1297_v58 = vadd.f32 %v1177_v59, %v363_v45  ;;  %v1527_v62 = vadd.f32 %v2875_v43, %v1459_v61  ;;  %1393 = vst.msk [vmem:[#allocation2 + $0x1c8] sm:$0xff] %vm272_vm3, %v1328_v60 }
 0x17d   : > { %v1428_v0 = vld [vmem:[#allocation2 + $0xc8] sm:$0xff]  ;;  %v1263_v48 = vpop.f32.mrf.mxu3 }
 0x17e   : > { %v1496_v37 = vadd.f32 %v2875_v43, %v1428_v0  ;;  %1362 = vst.msk [vmem:[#allocation2 + $0xd0] sm:$0xff] %vm272_vm3, %v1297_v58  ;;  %v1591_v2 = vmax.f32 %v1527_v62, 0.0  ;;  %v367_v58 = vld [vmem:[#allocation2 + $0xf0] sm:$0xff] }
 0x17f   : > { %v1183_v57 = vpop.f32.mrf.mxu1  ;;  %v1087_v5 = vpop.f32.mrf.mxu2 }
 0x180   : > { %v1560_v53 = vmax.f32 %v1496_v37, 0.0  ;;  %1655 = vst.msk [vmem:[%s2555_s22 + $0x1c0] sm:$0xff] %vm272_vm3, %v1591_v2  ;;  %v1257_v8 = vadd.f32 %v1256_v50, %v1087_v5 }
 0x181   : > { %v1009_v12 = vpop.f32.mrf.mxu0 }
 0x182   : > { %1624 = vst.msk [vmem:[%s2555_s22 + $0xc8] sm:$0xff] %vm272_vm3, %v1560_v53  ;;  %v1179_v1 = vadd.f32 %v1178_v63, %v1009_v12  ;;  %v1329_v13 = vadd.f32 %v1257_v8, %v395_v4 }
 0x183   : > { %v1460_v14 = vld [vmem:[#allocation2 + $0x1c8] sm:$0xff] }
 0x184   : > { %v1298_v54 = vadd.f32 %v1179_v1, %v364_v38  ;;  %v1528_v11 = vadd.f32 %v2875_v43, %v1460_v14  ;;  %1394 = vst.msk [vmem:[#allocation2 + $0x1d0] sm:$0xff] %vm272_vm3, %v1329_v13  ;;  %v399_v13 = vld [vmem:[#allocation2 + $0x1f0] sm:$0xff] }
 0x185   : > { %v1429_v16 = vld [vmem:[#allocation2 + $0xd0] sm:$0xff]  ;;  %v1266_v5 = vpop.f32.mrf.mxu3 }
 0x186   : > { %v1497_v15 = vadd.f32 %v2875_v43, %v1429_v16  ;;  %1363 = vst.msk [vmem:[#allocation2 + $0xd8] sm:$0xff] %vm272_vm3, %v1298_v54  ;;  %v1592_v19 = vmax.f32 %v1528_v11, 0.0  ;;  %v368_v16 = vld [vmem:[#allocation2 + $0xf8] sm:$0xff] }
 0x187   : > { %v1186_v18 = vpop.f32.mrf.mxu1  ;;  %v1089_v23 = vpop.f32.mrf.mxu2 }
 0x188   : > { %v1561_v21 = vmax.f32 %v1497_v15, 0.0  ;;  %1656 = vst.msk [vmem:[%s2555_s22 + $0x1c8] sm:$0xff] %vm272_vm3, %v1592_v19  ;;  %v1259_v7 = vadd.f32 %v1258_v6, %v1089_v23  ;;  %v370_v6 = vld [vmem:[#allocation2 + $0x108] sm:$0xff] }
 0x189   : > { %v1012_v25 = vpop.f32.mrf.mxu0 }
 0x18a   : > { %1625 = vst.msk [vmem:[%s2555_s22 + $0xd0] sm:$0xff] %vm272_vm3, %v1561_v21  ;;  %v1182_v20 = vadd.f32 %v1181_v49, %v1012_v25  ;;  %v1330_v30 = vadd.f32 %v1259_v7, %v396_v22 }
 0x18b   : > { %v1461_v31 = vld [vmem:[#allocation2 + $0x1d0] sm:$0xff] }
 0x18c   : > { %v1299_v3 = vadd.f32 %v1182_v20, %v365_v24  ;;  %v1529_v33 = vadd.f32 %v2875_v43, %v1461_v31  ;;  %1395 = vst.msk [vmem:[#allocation2 + $0x1d8] sm:$0xff] %vm272_vm3, %v1330_v30 }
 0x18d   : > { %v1430_v63 = vld [vmem:[#allocation2 + $0xd8] sm:$0xff]  ;;  %v1268_v31 = vpop.f32.mrf.mxu3 }
 0x18e   : > { %v1498_v34 = vadd.f32 %v2875_v43, %v1430_v63  ;;  %1364 = vst.msk [vmem:[#allocation2 + $0xe0] sm:$0xff] %vm272_vm3, %v1299_v3  ;;  %v1593_v35 = vmax.f32 %v1529_v33, 0.0  ;;  %v400_v3 = vld [vmem:[#allocation2 + $0x1f8] sm:$0xff] }
 0x18f   : > { %v1188_v29 = vpop.f32.mrf.mxu1  ;;  %v1092_v40 = vpop.f32.mrf.mxu2 }
 0x190   : > { %v1562_v26 = vmax.f32 %v1498_v34, 0.0  ;;  %1657 = vst.msk [vmem:[%s2555_s22 + $0x1d0] sm:$0xff] %vm272_vm3, %v1593_v35  ;;  %v1262_v41 = vadd.f32 %v1261_v28, %v1092_v40 }
 0x191   : > { %v1014_v9 = vpop.f32.mrf.mxu0 }
 0x192   : > { %1626 = vst.msk [vmem:[%s2555_s22 + $0xd8] sm:$0xff] %vm272_vm3, %v1562_v26  ;;  %v1184_v44 = vadd.f32 %v1183_v57, %v1014_v9  ;;  %v1331_v46 = vadd.f32 %v1262_v41, %v397_v32 }
 0x193   : > { %v1462_v47 = vld [vmem:[#allocation2 + $0x1d8] sm:$0xff] }
 0x194   : > { %v1300_v17 = vadd.f32 %v1184_v44, %v366_v42  ;;  %v1530_v49 = vadd.f32 %v2875_v43, %v1462_v47  ;;  %1396 = vst.msk [vmem:[#allocation2 + $0x1e0] sm:$0xff] %vm272_vm3, %v1331_v46 }
 0x195   : > { %v1431_v50 = vld [vmem:[#allocation2 + $0xe0] sm:$0xff] }
 0x196   : > { %v1499_v36 = vadd.f32 %v2875_v43, %v1431_v50  ;;  %1365 = vst.msk [vmem:[#allocation2 + $0xe8] sm:$0xff] %vm272_vm3, %v1300_v17  ;;  %v1594_v55 = vmax.f32 %v1530_v49, 0.0 }
 0x197   : > { %v1191_v52 = vpop.f32.mrf.mxu1  ;;  %v1094_v59 = vpop.f32.mrf.mxu2 }
 0x198   : > { %v1192_v56 = vadd.f32 %v1191_v52, %v2522_v10  ;;  %v1563_v45 = vmax.f32 %v1499_v36, 0.0  ;;  %1658 = vst.msk [vmem:[%s2555_s22 + $0x1d8] sm:$0xff] %vm272_vm3, %v1594_v55  ;;  %v1264_v61 = vadd.f32 %v1263_v48, %v1094_v59 }
 0x199   : > { %v1017_v62 = vpop.f32.mrf.mxu0 }
 0x19a   : > { %v1303_v60 = vadd.f32 %v1192_v56, %v369_v51  ;;  %1627 = vst.msk [vmem:[%s2555_s22 + $0xe0] sm:$0xff] %vm272_vm3, %v1563_v45  ;;  %v1187_v0 = vadd.f32 %v1186_v18, %v1017_v62  ;;  %v1332_v37 = vadd.f32 %v1264_v61, %v398_v39 }
 0x19b   : > { %v1463_v57 = vld [vmem:[#allocation2 + $0x1e0] sm:$0xff] }
 0x19c   : > { %1368 = vst.msk [vmem:[#allocation2 + $0x100] sm:$0xff] %vm272_vm3, %v1303_v60  ;;  %v1301_v2 = vadd.f32 %v1187_v0, %v367_v58  ;;  %v1531_v10 = vadd.f32 %v2875_v43, %v1463_v57 }
 0x19d   : > { %v1432_v53 = vld [vmem:[#allocation2 + $0xe8] sm:$0xff]  ;;  %1397 = vst.msk [vmem:[#allocation2 + $0x1e8] sm:$0xff] %vm272_vm3, %v1332_v37 }
 0x19e   : > { %v1500_v4 = vadd.f32 %v2875_v43, %v1432_v53  ;;  %1366 = vst.msk [vmem:[#allocation2 + $0xf0] sm:$0xff] %vm272_vm3, %v1301_v2  ;;  %v1595_v38 = vmax.f32 %v1531_v10, 0.0 }
 0x19f   : > { %v1193_v8 = vpop.f32.mrf.mxu1  ;;  %v1097_v14 = vpop.f32.mrf.mxu2 }
 0x1a0   : > { %v1194_v12 = vadd.f32 %v1193_v8, %v2561_v27  ;;  %v1564_v1 = vmax.f32 %v1500_v4, 0.0  ;;  %1659 = vst.msk [vmem:[%s2555_s22 + $0x1e0] sm:$0xff] %vm272_vm3, %v1595_v38  ;;  %v1267_v11 = vadd.f32 %v1266_v5, %v1097_v14 }
 0x1a1   : > { %v1019_v15 = vpop.f32.mrf.mxu0 }
 0x1a2   : > { %v1304_v54 = vadd.f32 %v1194_v12, %v370_v6  ;;  %1628 = vst.msk [vmem:[%s2555_s22 + $0xe8] sm:$0xff] %vm272_vm3, %v1564_v1  ;;  %v1189_v19 = vadd.f32 %v1188_v29, %v1019_v15  ;;  %v1333_v27 = vadd.f32 %v1267_v11, %v399_v13 }
 0x1a3   : > { %v1435_v18 = vld [vmem:[#allocation2 + $0x100] sm:$0xff] }
 0x1a4   : > { %v1503_v21 = vadd.f32 %v2875_v43, %v1435_v18  ;;  %1369 = vst.msk [vmem:[#allocation2 + $0x108] sm:$0xff] %vm272_vm3, %v1304_v54  ;;  %v1464_v22 = vld [vmem:[#allocation2 + $0x1e8] sm:$0xff]  ;;  %v1302_v23 = vadd.f32 %v1189_v19, %v368_v16 }
 0x1a5   : > { %v1532_v24 = vadd.f32 %v2875_v43, %v1464_v22  ;;  %v1433_v25 = vld [vmem:[#allocation2 + $0xf0] sm:$0xff]  ;;  %1398 = vst.msk [vmem:[#allocation2 + $0x1f0] sm:$0xff] %vm272_vm3, %v1333_v27 }
 0x1a6   : > { %v1567_v7 = vmax.f32 %v1503_v21, 0.0  ;;  %v1501_v28 = vadd.f32 %v2875_v43, %v1433_v25  ;;  %1367 = vst.msk [vmem:[#allocation2 + $0xf8] sm:$0xff] %vm272_vm3, %v1302_v23 }
 0x1a7   : > { %v1596_v20 = vmax.f32 %v1532_v24, 0.0  ;;  %v1099_v33 = vpop.f32.mrf.mxu2 }
 0x1a8   : > { %1631 = vst.msk [vmem:[%s2555_s22 + $0x100] sm:$0xff] %vm272_vm3, %v1567_v7  ;;  %v1565_v30 = vmax.f32 %v1501_v28, 0.0  ;;  %v1269_v63 = vadd.f32 %v1268_v31, %v1099_v33 }
 0x1a9   : > { %1660 = vst.msk [vmem:[%s2555_s22 + $0x1e8] sm:$0xff] %vm272_vm3, %v1596_v20 }
 0x1aa   : > { %1629 = vst.msk [vmem:[%s2555_s22 + $0xf0] sm:$0xff] %vm272_vm3, %v1565_v30  ;;  %v1334_v35 = vadd.f32 %v1269_v63, %v400_v3 }
 0x1ab   : > { %v1436_v34 = vld [vmem:[#allocation2 + $0x108] sm:$0xff] }
 0x1ac   : > { %v1504_v29 = vadd.f32 %v2875_v43, %v1436_v34  ;;  %v1465_v26 = vld [vmem:[#allocation2 + $0x1f0] sm:$0xff]  ;;  %1399 = vst.msk [vmem:[#allocation2 + $0x1f8] sm:$0xff] %vm272_vm3, %v1334_v35 }
 0x1ad   : > { %v1533_v40 = vadd.f32 %v2875_v43, %v1465_v26  ;;  %v1434_v41 = vld [vmem:[#allocation2 + $0xf8] sm:$0xff] }
 0x1ae   : > { %v1568_v32 = vmax.f32 %v1504_v29, 0.0  ;;  %v1502_v42 = vadd.f32 %v2875_v43, %v1434_v41 }
 0x1af   : > { %v1597_v9 = vmax.f32 %v1533_v40, 0.0 }
 0x1b0   : > { %1632 = vst.msk [vmem:[%s2555_s22 + $0x108] sm:$0xff] %vm272_vm3, %v1568_v32  ;;  %v1566_v44 = vmax.f32 %v1502_v42, 0.0 }
 0x1b1   : > { %1661 = vst.msk [vmem:[%s2555_s22 + $0x1f0] sm:$0xff] %vm272_vm3, %v1597_v9 }
 0x1b2   : > { %1630 = vst.msk [vmem:[%s2555_s22 + $0xf8] sm:$0xff] %vm272_vm3, %v1566_v44 }
 0x1b3   : > { %v1466_v46 = vld [vmem:[#allocation2 + $0x1f8] sm:$0xff] }
 0x1b4   : > { %v1534_v47 = vadd.f32 %v2875_v43, %v1466_v46 }
 0x1b6   : > { %v1598_v48 = vmax.f32 %v1534_v47, 0.0 }
 0x1b8   : > { %1662 = vst.msk [vmem:[%s2555_s22 + $0x1f8] sm:$0xff] %vm272_vm3, %v1598_v48 }
 0x1b9 PF: > { %s13_s14 = sadd.s32 1, %s2249_s14   ;;  %s2998_s12 = smov %s2245_s13 }
 0x1ba   : > { %p10_p5 = scmp.ge.s32.totalorder %s13_s14, 18   ;;  %s2999_s13 = smov %s3001_s15 }
 0x1bc   :  { %12 = sbr.rel (!%p10_p5) target bundleno = 2 (0x2), region = 76 }

</bundles_post_ra>
